<compile_context>
chip_gen: v7x
topology: tpu7x:2x2x1
jax: 0.10.0
libtpu: 0.0.40
codegen_flags: <defaults>
</compile_context>

<pallas_src>
import jax
import jax.numpy as jnp
from jax import lax
from jax.experimental import pallas as pl
from jax.experimental.pallas import tpu as pltpu

HIDDEN = 256


# ---------------------------------------------------------------------------
# Phase 1: batched MLP + input-to-hidden gate contribution (time-independent).
# ---------------------------------------------------------------------------
def _gates_kernel(x_ref, w1_ref, b1_ref, w2_ref, b2_ref, wih_ref, bg_ref, gx_ref):
    x = x_ref[...]                                                    # (tile_m, obs)
    h1 = jnp.maximum(
        jnp.dot(x, w1_ref[...], preferred_element_type=jnp.float32) + b1_ref[...], 0.0)
    h2 = jnp.maximum(
        jnp.dot(h1, w2_ref[...], preferred_element_type=jnp.float32) + b2_ref[...], 0.0)
    gx_ref[...] = (jnp.dot(h2, wih_ref[...], preferred_element_type=jnp.float32)
                   + bg_ref[...])                                     # (tile_m, 4H)


# ---------------------------------------------------------------------------
# Phase 2: serial LSTM recurrence; only h_prev @ Whh remains on the hot path.
# ---------------------------------------------------------------------------
def _recurrence_kernel(gx_ref, whh_ref, h0_ref, c0_ref, hn_ref, h_scr, c_scr):
    blk = pl.program_id(0)
    t_block = gx_ref.shape[0]
    H = HIDDEN

    @pl.when(blk == 0)
    def _():
        h_scr[...] = h0_ref[...]
        c_scr[...] = c0_ref[...]

    whh = whh_ref[...]                                                # hoisted load

    def step(t, carry):
        h, c = carry
        gates = gx_ref[t] + jnp.dot(h, whh, preferred_element_type=jnp.float32)  # (B,4H)
        i_g = jax.nn.sigmoid(gates[:, 0 * H:1 * H])
        f_g = jax.nn.sigmoid(gates[:, 1 * H:2 * H])
        g_g = jnp.tanh(gates[:, 2 * H:3 * H])
        o_g = jax.nn.sigmoid(gates[:, 3 * H:4 * H])
        c_new = f_g * c + i_g * g_g
        h_new = o_g * jnp.tanh(c_new)
        return h_new, c_new

    h, c = lax.fori_loop(0, t_block, step, (h_scr[...], c_scr[...]),
                         unroll=min(t_block, 8))
    h_scr[...] = h
    c_scr[...] = c

    @pl.when(blk == pl.num_programs(0) - 1)
    def _():
        hn_ref[...] = h                                               # lane-dense (B, 256)


# ---------------------------------------------------------------------------
# Wrapper
# ---------------------------------------------------------------------------
def _pick_tile_m(m, cap=512):
    """Largest row tile for phase 1: <=cap, multiple of 8, divides m (else full m)."""
    if m <= cap:
        return m
    for t in range(cap, 7, -8):
        if m % t == 0:
            return t
    return m


def _largest_divisor_leq(n, cap):
    d = min(n, cap)
    while n % d != 0:
        d -= 1
    return d


def prepare_params(params, weight_dtype=jnp.float32):
    """One-time preprocessing (transposes, bias fold, optional bf16 weight cast)."""
    w1, b1, w2, b2, wih, whh, bih, bhh, w3, b3 = params
    w1_t = w1.T.astype(weight_dtype)                  # (obs, 256)
    w2_t = w2.T.astype(weight_dtype)                  # (256, 256)
    wih_t = wih.T.astype(weight_dtype)                # (256, 1024)
    whh_t = whh.T.astype(weight_dtype)                # (256, 1024)
    bg = (bih + bhh).reshape(1, -1).astype(jnp.float32)   # folded LSTM bias (1, 1024)
    b1r = b1.reshape(1, -1).astype(jnp.float32)
    b2r = b2.reshape(1, -1).astype(jnp.float32)
    w3_t = w3.T.astype(jnp.float32)                   # (256, 1)
    b3r = b3.reshape(1, -1).astype(jnp.float32)       # (1, 1)
    return (w1_t, b1r, w2_t, b2r, wih_t, bg, whh_t, w3_t, b3r)


def model_critic_forward(x, hidden_in, prep):
    """x: (B, T, obs) f32; hidden_in: ((L,B,256),(L,B,256)); returns (B, 1) f32."""
    w1_t, b1r, w2_t, b2r, wih_t, bg, whh_t, w3_t, b3r = prep
    B, T, D = x.shape
    H = HIDDEN
    # TODO(synk): only num_layers_lstm == 1 is implemented (matches the default).
    h0 = hidden_in[0][0]                               # (B, H)
    c0 = hidden_in[1][0]                               # (B, H)

    # ---- Phase 1: batched over all T*B rows (time-major so no post-transpose) ----
    M = T * B
    x_flat = jnp.transpose(x, (1, 0, 2)).reshape(M, D)
    tile_m = _pick_tile_m(M)

    const = lambda shape: pl.BlockSpec(shape, lambda i: (0, 0))
    gates_flat = pl.pallas_call(
        _gates_kernel,
        out_shape=jax.ShapeDtypeStruct((M, 4 * H), jnp.float32),
        grid_spec=pltpu.PrefetchScalarGridSpec(
            num_scalar_prefetch=0,
            grid=(M // tile_m,),
            in_specs=[
                pl.BlockSpec((tile_m, D), lambda i: (i, 0)),
                const(w1_t.shape), const(b1r.shape),
                const(w2_t.shape), const(b2r.shape),
                const(wih_t.shape), const(bg.shape),
            ],
            out_specs=pl.BlockSpec((tile_m, 4 * H), lambda i: (i, 0)),
        ),
        compiler_params=pltpu.CompilerParams(
            dimension_semantics=("parallel",)),          # megacore-shardable on v7x
    )(x_flat, w1_t, b1r, w2_t, b2r, wih_t, bg)

    gates_tm = gates_flat.reshape(T, B, 4 * H)           # time-major (T, B, 4H)

    # ---- Phase 2: serial recurrence, T-blocked pipeline of gates_x ----
    t_block = _largest_divisor_leq(T, 128)

    h_n = pl.pallas_call(
        _recurrence_kernel,
        out_shape=jax.ShapeDtypeStruct((B, H), jnp.float32),
        grid_spec=pltpu.PrefetchScalarGridSpec(
            num_scalar_prefetch=0,
            grid=(T // t_block,),
            in_specs=[
                pl.BlockSpec((t_block, B, 4 * H), lambda i: (i, 0, 0)),
                pl.BlockSpec(whh_t.shape, lambda i: (0, 0)),
                pl.BlockSpec((B, H), lambda i: (0, 0)),
                pl.BlockSpec((B, H), lambda i: (0, 0)),
            ],
            out_specs=pl.BlockSpec((B, H), lambda i: (0, 0)),
            scratch_shapes=[
                pltpu.VMEM((B, H), jnp.float32),          # h carry
                pltpu.VMEM((B, H), jnp.float32),          # c carry
            ],
        ),
        compiler_params=pltpu.CompilerParams(
            dimension_semantics=("arbitrary",)),
    )(gates_tm, whh_t, h0, c0)

    # Value head: Linear(256, 1) + Tanh on lane-dense h_n (done in XLA; a (256,1)
    # matmul would waste a full MXU pass and force a masked last-dim-1 store).
    return jnp.tanh(h_n @ w3_t + b3r)


# ---------------------------------------------------------------------------
# Pure-JAX reference (replica of the PyTorch forward) + synthetic params
# ---------------------------------------------------------------------------
def _reference_forward(x, hidden_in, params):
    w1, b1, w2, b2, wih, whh, bih, bhh, w3, b3 = params
    H = HIDDEN
    h = hidden_in[0][0]
    c = hidden_in[1][0]
    z = jnp.maximum(x @ w1.T + b1, 0.0)
    z = jnp.maximum(z @ w2.T + b2, 0.0)                  # (B, T, 256)
    T = x.shape[1]
    for t in range(T):
        gates = z[:, t, :] @ wih.T + bih + h @ whh.T + bhh
        i = jax.nn.sigmoid(gates[:, 0 * H:1 * H])
        f = jax.nn.sigmoid(gates[:, 1 * H:2 * H])
        g = jnp.tanh(gates[:, 2 * H:3 * H])
        o = jax.nn.sigmoid(gates[:, 3 * H:4 * H])
        c = f * c + i * g
        h = o * jnp.tanh(c)
    return jnp.tanh(h @ w3.T + b3)


def init_params(key, obs_size):
    """Deterministic synthetic parameters with PyTorch shapes."""
    H = HIDDEN
    ks = jax.random.split(key, 10)
    u = lambda k, shape, bound: jax.random.uniform(k, shape, jnp.float32, -bound, bound)
    w1 = u(ks[0], (H, obs_size), 1.0 / jnp.sqrt(obs_size))
    b1 = u(ks[1], (H,), 1.0 / jnp.sqrt(obs_size))
    w2 = u(ks[2], (H, H), 1.0 / jnp.sqrt(H))
    b2 = u(ks[3], (H,), 1.0 / jnp.sqrt(H))
    wih = u(ks[4], (4 * H, H), 1.0 / jnp.sqrt(H))
    whh = u(ks[5], (4 * H, H), 1.0 / jnp.sqrt(H))
    bih = u(ks[6], (4 * H,), 1.0 / jnp.sqrt(H))
    bhh = u(ks[7], (4 * H,), 1.0 / jnp.sqrt(H))
    w3 = u(ks[8], (1, H), 1.0 / jnp.sqrt(H))
    b3 = u(ks[9], (1,), 1.0 / jnp.sqrt(H))
    return (w1, b1, w2, b2, wih, whh, bih, bhh, w3, b3)


if __name__ == "__main__":
    B, T, OBS = 2, 8, 32
    key = jax.random.PRNGKey(0)
    k_x, k_p = jax.random.split(key)
    x = jax.random.normal(k_x, (B, T, OBS), jnp.float32)
    # ModelCritic.update_hidden_state: zeros of shape (num_layers, B, 256)
    hidden_in = (jnp.zeros((1, B, HIDDEN), jnp.float32),
                 jnp.zeros((1, B, HIDDEN), jnp.float32))
    params = init_params(k_p, OBS)
    prep = prepare_params(params)          # one-time preprocessing, off the hot path

    out = jax.block_until_ready(model_critic_forward(x, hidden_in, prep))
    ref = jax.block_until_ready(_reference_forward(x, hidden_in, params))
    assert out.shape == (B, 1)
    assert jnp.allclose(out, ref, atol=1e-4, rtol=1e-4), (out, ref)
    print("KERNEL_OK")
</pallas_src>

<mosaic_0001>
module attributes {stable_mosaic.version = 11 : i64} {
  func.func @_gates_kernel(%arg0: i32, %arg1: memref<16x32xf32, #tpu.memory_space<vmem>>, %arg2: memref<32x256xf32, #tpu.memory_space<vmem>>, %arg3: memref<1x256xf32, #tpu.memory_space<vmem>>, %arg4: memref<256x256xf32, #tpu.memory_space<vmem>>, %arg5: memref<1x256xf32, #tpu.memory_space<vmem>>, %arg6: memref<256x1024xf32, #tpu.memory_space<vmem>>, %arg7: memref<1x1024xf32, #tpu.memory_space<vmem>>, %arg8: memref<16x1024xf32, #tpu.memory_space<vmem>>) attributes {dimension_semantics = [#tpu.dimension_semantics<parallel>], iteration_bounds = array<i64: 1>, scalar_prefetch = 0 : i64, scratch_operands = 0 : i64, tpu.core_type = #tpu.core_type<tc>, window_params = [{transform_indices = @transform_0, window_bounds = array<i64: 16, 32>}, {pipeline_mode = #tpu.pipeline_mode<synchronous>, transform_indices = @transform_1, window_bounds = array<i64: 32, 256>}, {pipeline_mode = #tpu.pipeline_mode<synchronous>, transform_indices = @transform_2, window_bounds = array<i64: 1, 256>}, {pipeline_mode = #tpu.pipeline_mode<synchronous>, transform_indices = @transform_3, window_bounds = array<i64: 256, 256>}, {pipeline_mode = #tpu.pipeline_mode<synchronous>, transform_indices = @transform_4, window_bounds = array<i64: 1, 256>}, {pipeline_mode = #tpu.pipeline_mode<synchronous>, transform_indices = @transform_5, window_bounds = array<i64: 256, 1024>}, {pipeline_mode = #tpu.pipeline_mode<synchronous>, transform_indices = @transform_6, window_bounds = array<i64: 1, 1024>}, {transform_indices = @transform_7, window_bounds = array<i64: 16, 1024>}]} {
    %c0 = arith.constant 0 : index
    %c0_0 = arith.constant 0 : index
    %0 = vector.load %arg1[%c0, %c0_0] : memref<16x32xf32, #tpu.memory_space<vmem>>, vector<16x32xf32>
    %c0_1 = arith.constant 0 : index
    %c0_2 = arith.constant 0 : index
    %1 = vector.load %arg2[%c0_1, %c0_2] : memref<32x256xf32, #tpu.memory_space<vmem>>, vector<32x256xf32>
    %cst = arith.constant dense<0.000000e+00> : vector<16x256xf32>
    %2 = tpu.matmul %0, %1, %cst {dimension_numbers = #tpu.dot_dimension_numbers<[1], [0], [0], [1], [0, 0, 1, 1], [], []>} : vector<16x32xf32>, vector<32x256xf32>, vector<16x256xf32> -> vector<16x256xf32>
    %c0_3 = arith.constant 0 : index
    %c0_4 = arith.constant 0 : index
    %3 = vector.load %arg3[%c0_3, %c0_4] : memref<1x256xf32, #tpu.memory_space<vmem>>, vector<1x256xf32>
    %4 = vector.broadcast %3 : vector<1x256xf32> to vector<16x256xf32>
    %5 = arith.addf %2, %4 : vector<16x256xf32>
    %cst_5 = arith.constant 0.000000e+00 : f32
    %6 = vector.broadcast %cst_5 : f32 to vector<16x256xf32>
    %7 = arith.maximumf %5, %6 : vector<16x256xf32>
    %c0_6 = arith.constant 0 : index
    %c0_7 = arith.constant 0 : index
    %8 = vector.load %arg4[%c0_6, %c0_7] : memref<256x256xf32, #tpu.memory_space<vmem>>, vector<256x256xf32>
    %cst_8 = arith.constant dense<0.000000e+00> : vector<16x256xf32>
    %9 = tpu.matmul %7, %8, %cst_8 {dimension_numbers = #tpu.dot_dimension_numbers<[1], [0], [0], [1], [0, 0, 1, 1], [], []>} : vector<16x256xf32>, vector<256x256xf32>, vector<16x256xf32> -> vector<16x256xf32>
    %c0_9 = arith.constant 0 : index
    %c0_10 = arith.constant 0 : index
    %10 = vector.load %arg5[%c0_9, %c0_10] : memref<1x256xf32, #tpu.memory_space<vmem>>, vector<1x256xf32>
    %11 = vector.broadcast %10 : vector<1x256xf32> to vector<16x256xf32>
    %12 = arith.addf %9, %11 : vector<16x256xf32>
    %cst_11 = arith.constant 0.000000e+00 : f32
    %13 = vector.broadcast %cst_11 : f32 to vector<16x256xf32>
    %14 = arith.maximumf %12, %13 : vector<16x256xf32>
    %c0_12 = arith.constant 0 : index
    %c0_13 = arith.constant 0 : index
    %15 = vector.load %arg6[%c0_12, %c0_13] : memref<256x1024xf32, #tpu.memory_space<vmem>>, vector<256x1024xf32>
    %cst_14 = arith.constant dense<0.000000e+00> : vector<16x1024xf32>
    %16 = tpu.matmul %14, %15, %cst_14 {dimension_numbers = #tpu.dot_dimension_numbers<[1], [0], [0], [1], [0, 0, 1, 1], [], []>} : vector<16x256xf32>, vector<256x1024xf32>, vector<16x1024xf32> -> vector<16x1024xf32>
    %c0_15 = arith.constant 0 : index
    %c0_16 = arith.constant 0 : index
    %17 = vector.load %arg7[%c0_15, %c0_16] : memref<1x1024xf32, #tpu.memory_space<vmem>>, vector<1x1024xf32>
    %18 = vector.broadcast %17 : vector<1x1024xf32> to vector<16x1024xf32>
    %19 = arith.addf %16, %18 : vector<16x1024xf32>
    %c0_17 = arith.constant 0 : index
    %c0_18 = arith.constant 0 : index
    %20 = vector.load %arg8[%c0_17, %c0_18] : memref<16x1024xf32, #tpu.memory_space<vmem>>, vector<16x1024xf32>
    tpu.vector_store %arg8[%c0_17, %c0_18], %19 {strides = array<i32>} : memref<16x1024xf32, #tpu.memory_space<vmem>>, vector<16x1024xf32>,
    return
  }
  func.func @transform_0(%arg0: i32) -> (i32, i32) {
    %c0_i32 = arith.constant 0 : i32
    %c0_i32_0 = arith.constant 0 : i32
    return %arg0, %c0_i32 : i32, i32
  }
  func.func @transform_1(%arg0: i32) -> (i32, i32) {
    %c0_i32 = arith.constant 0 : i32
    %c0_i32_0 = arith.constant 0 : i32
    %c0_i32_1 = arith.constant 0 : i32
    return %c0_i32, %c0_i32_0 : i32, i32
  }
  func.func @transform_2(%arg0: i32) -> (i32, i32) {
    %c0_i32 = arith.constant 0 : i32
    %c0_i32_0 = arith.constant 0 : i32
    %c0_i32_1 = arith.constant 0 : i32
    return %c0_i32, %c0_i32_0 : i32, i32
  }
  func.func @transform_3(%arg0: i32) -> (i32, i32) {
    %c0_i32 = arith.constant 0 : i32
    %c0_i32_0 = arith.constant 0 : i32
    %c0_i32_1 = arith.constant 0 : i32
    return %c0_i32, %c0_i32_0 : i32, i32
  }
  func.func @transform_4(%arg0: i32) -> (i32, i32) {
    %c0_i32 = arith.constant 0 : i32
    %c0_i32_0 = arith.constant 0 : i32
    %c0_i32_1 = arith.constant 0 : i32
    return %c0_i32, %c0_i32_0 : i32, i32
  }
  func.func @transform_5(%arg0: i32) -> (i32, i32) {
    %c0_i32 = arith.constant 0 : i32
    %c0_i32_0 = arith.constant 0 : i32
    %c0_i32_1 = arith.constant 0 : i32
    return %c0_i32, %c0_i32_0 : i32, i32
  }
  func.func @transform_6(%arg0: i32) -> (i32, i32) {
    %c0_i32 = arith.constant 0 : i32
    %c0_i32_0 = arith.constant 0 : i32
    %c0_i32_1 = arith.constant 0 : i32
    return %c0_i32, %c0_i32_0 : i32, i32
  }
  func.func @transform_7(%arg0: i32) -> (i32, i32) {
    %c0_i32 = arith.constant 0 : i32
    %c0_i32_0 = arith.constant 0 : i32
    return %arg0, %c0_i32 : i32, i32
  }
}

</mosaic_0001>

<bundles_post_ra>
// kernel: tpu_custom_call.1
= control target key start
LH: loop header
LB: loop body
LE: loop exit
PB: predicated region body
PF: predicated region fallthrough
CT: control target
= control target key end

     0   :  { %12 = vsyncpa [#allocation3], 0  ;;  %s1630_s0 = inlined_call_operand.hbm [shape: f32[16,32], index: 0, kind: input, shape index: {}]   ;;  %s1631_s1 = inlined_call_operand.hbm [shape: f32[32,256], index: 1, kind: input, shape index: {}]   ;;  %s1632_s2 = inlined_call_operand.vmem [shape: f32[1,256], index: 2, kind: input, shape index: {}]   ;;  %s1633_s3 = inlined_call_operand.hbm [shape: f32[256,256], index: 3, kind: input, shape index: {}]   ;;  %s1634_s4 = inlined_call_operand.vmem [shape: f32[1,256], index: 4, kind: input, shape index: {}]   ;;  %s1635_s5 = inlined_call_operand.hbm [shape: f32[256,1024], index: 5, kind: input, shape index: {}]   ;;  %s1636_s6 = inlined_call_operand.vmem [shape: f32[1,1024], index: 6, kind: input, shape index: {}]   ;;  %s1637_s7 = inlined_call_operand.hbm [shape: f32[16,1024], index: 7, kind: output, shape index: {}]  }
   0x1   :  { %13 = vsyncpa [#allocation6], 0 }
   0x2   :  { %14 = vsyncpa [#allocation9], 0 }
   0x3   :  { %15 = vsyncpa [#allocation4], 0  ;;  %s1450_s24 = smov [#allocation5]   ;;  %s1332_s28 = scalar_lea.hbm %s1631_s1, 1024 }
   0x4   :  { %s33_s25 = sshll.u32 %s1450_s24, 4  ;;  %p1333_p0 = scmp.ne.s32.totalorder %s1631_s1, %s1332_s28  ;;  %s34_s25 = int_to_ptr.vmem [resolvable:$true] %s33_s25 }
   0x5   :  { %p1336_p1 = scmp.lt.u32.totalorder %s1332_s28, %s1631_s1 }
   0x7   :  { %p1338_p2 = pnand %p1336_p1, %p1333_p0 }
   0x9   :  { %1341 = shalt.err (!%p1338_p2)
}
   0xa   :  { %s1342_s10 = scalar_lea.vmem %s34_s25, 1024  ;;  %p1347_p4 = scmp.lt.s32.totalorder %s34_s25, %s34_s25 }
   0xb   :  { %p1343_p3 = scmp.ne.s32.totalorder %s34_s25, %s1342_s10  ;;  %p1348_p5 = scmp.lt.s32.totalorder %s1342_s10, %s1342_s10 }
   0xd   :  { %p1349_p6 = por %p1348_p5, %p1347_p4 }
   0xf   :  { %p1350_p7 = pnand %p1349_p6, %p1343_p3 }
  0x11   :  { %1353 = shalt.err (!%p1350_p7)
}
  0x12   :  { %s1451_s11 = smov 256   ;;  %s1452_s12 = smov 16  }
  0x13   :  { %39 = dma.hbm_to_vmem [thread:$0]  %s1631_s1, 1024, %s34_s25, [#allocation6], %s1451_s11, %s1451_s11, %s1452_s12  }
  0x14   :  { %s1453_s15 = smov [#allocation2]   ;;  %s1354_s19 = scalar_lea.hbm %s1630_s0, 256 }
  0x15   :  { %s21_s16 = sshll.u32 %s1453_s15, 4  ;;  %p1355_p8 = scmp.ne.s32.totalorder %s1630_s0, %s1354_s19  ;;  %s22_s16 = int_to_ptr.vmem [resolvable:$true] %s21_s16 }
  0x16   :  { %p1358_p9 = scmp.lt.u32.totalorder %s1354_s19, %s1630_s0 }
  0x18   :  { %p1360_p10 = pnand %p1358_p9, %p1355_p8 }
  0x1a   :  { %1363 = shalt.err (!%p1360_p10)
}
  0x1b   :  { %s1364_s24 = scalar_lea.vmem %s22_s16, 256  ;;  %p1369_p12 = scmp.lt.s32.totalorder %s22_s16, %s22_s16 }
  0x1c   :  { %p1365_p11 = scmp.ne.s32.totalorder %s22_s16, %s1364_s24  ;;  %p1370_p13 = scmp.lt.s32.totalorder %s1364_s24, %s1364_s24 }
  0x1e   :  { %p1371_p0 = por %p1370_p13, %p1369_p12 }
  0x20   :  { %p1372_p1 = pnand %p1371_p0, %p1365_p11 }
  0x22   :  { %1375 = shalt.err (!%p1372_p1)
}
  0x23   :  { %s1454_s1 = smov 128   ;;  %s1455_s25 = smov 8  }
  0x24   :  { %27 = dma.hbm_to_vmem [thread:$0]  %s1630_s0, 256, %s22_s16, [#allocation3], %s1454_s1, %s1454_s1, %s1455_s25  }
  0x25   :  { %s1456_s28 = smov [#allocation7]   ;;  %s1457_s30 = smov [#allocation8]  }
  0x26   :  { %s47_s29 = sshll.u32 %s1456_s28, 4  ;;  %s61_s8 = sshll.u32 %s1457_s30, 4  ;;  %s48_s29 = int_to_ptr.vmem [resolvable:$true] %s47_s29  ;;  %s1529_s8 = int_to_ptr.vmem [resolvable:$true] %s61_s8 }
  0x27   :  { %s1376_s13 = scalar_lea.hbm %s1633_s3, 8192 }
  0x28   :  { %p1377_p2 = scmp.ne.s32.totalorder %s1633_s3, %s1376_s13  ;;  %p1380_p3 = scmp.lt.u32.totalorder %s1376_s13, %s1633_s3 }
  0x2a   :  { %p1382_p4 = pnand %p1380_p3, %p1377_p2 }
  0x2c   :  { %1385 = shalt.err (!%p1382_p4)
}
  0x2d   :  { %s1386_s0 = scalar_lea.vmem %s48_s29, 8192  ;;  %p1391_p6 = scmp.lt.s32.totalorder %s48_s29, %s48_s29 }
  0x2e   :  { %p1387_p5 = scmp.ne.s32.totalorder %s48_s29, %s1386_s0  ;;  %p1392_p7 = scmp.lt.s32.totalorder %s1386_s0, %s1386_s0 }
  0x30   :  { %p1393_p8 = por %p1392_p7, %p1391_p6 }
  0x32   :  { %p1394_p9 = pnand %p1393_p8, %p1387_p5 }
  0x34   :  { %1397 = shalt.err (!%p1394_p9)
}
  0x35   :  { %53 = dma.hbm_to_vmem [thread:$0]  %s1633_s3, 8192, %s48_s29, [#allocation6], %s1451_s11, %s1451_s11, %s1452_s12  }
  0x36   :  { %s1398_s22 = scalar_lea.hbm %s1635_s5, 32768 }
  0x37   :  { %p1399_p10 = scmp.ne.s32.totalorder %s1635_s5, %s1398_s22  ;;  %p1402_p11 = scmp.lt.u32.totalorder %s1398_s22, %s1635_s5 }
  0x39   :  { %p1404_p12 = pnand %p1402_p11, %p1399_p10 }
  0x3b   :  { %1407 = shalt.err (!%p1404_p12)
}
  0x3c   :  { %s1408_s26 = scalar_lea.vmem %s1529_s8, 32768  ;;  %p1413_p0 = scmp.lt.s32.totalorder %s1529_s8, %s1529_s8 }
  0x3d   :  { %p1409_p13 = scmp.ne.s32.totalorder %s1529_s8, %s1408_s26  ;;  %p1414_p1 = scmp.lt.s32.totalorder %s1408_s26, %s1408_s26 }
  0x3f   :  { %p1415_p2 = por %p1414_p1, %p1413_p0 }
  0x41   :  { %p1416_p3 = pnand %p1415_p2, %p1409_p13 }
  0x43   :  { %1419 = shalt.err (!%p1416_p3)
}
  0x44   :  { %s1458_s3 = smov 1024   ;;  %s1459_s11 = smov 64  }
  0x45   :  { %67 = dma.hbm_to_vmem [thread:$0]  %s1635_s5, 32768, %s1529_s8, [#allocation9], %s1458_s3, %s1458_s3, %s1459_s11  }
  0x46   :  { %1442 = dma.done.wait [#allocation3], 256  }
  0x47   :  { %1443 = vsyncadd [#allocation3], 4294967040 }
  0x48   :  { %1444 = dma.done.wait [#allocation6], 9216  }
  0x49   :  { %1445 = vsyncadd [#allocation6], 4294958080 }
  0x4a   :  { %1446 = dma.done.wait [#allocation9], 32768  }
  0x4b   :  { %1447 = vsyncadd [#allocation9], 4294934528  ;;  %v1460_v0 = vmov 0.0   ;;  %v85_v1 = vld [vmem:[#allocation5 + $0x8] sm:$0xff]  ;;  %v87_v2 = vld [vmem:[#allocation5 + $0x18] sm:$0xff]  ;;  %vm104_vm0 = vcmask 261120  }
  0x4c   :  { %175 = vmatprep.mubr.f32.mxu0 %v1460_v0  ;;  %v84_v3 = vld [vmem:[#allocation5] sm:$0xff]  ;;  %v992_v4 = vpack.c.bf16 %v87_v2, %v85_v1  ;;  %v86_v5 = vld [vmem:[#allocation5 + $0x10] sm:$0xff]  ;;  %v89_v6 = vld [vmem:[#allocation5 + $0x28] sm:$0xff] }
  0x4d   :  { %v91_v7 = vld [vmem:[#allocation5 + $0x38] sm:$0xff]  ;;  %v994_v8 = vpack.c.bf16 %v86_v5, %v84_v3  ;;  %v88_v10 = vld [vmem:[#allocation5 + $0x20] sm:$0xff]  ;;  %v90_v11 = vld [vmem:[#allocation5 + $0x30] sm:$0xff] }
  0x4e   :  { %v996_v9 = vpack.c.bf16 %v91_v7, %v89_v6  ;;  %993 = vmatprep.subr.bf16.mxu0 %v992_v4  ;;  %v193_v12 = vld [vmem:[#allocation7 + $0x8] sm:$0xff]  ;;  %v195_v13 = vld [vmem:[#allocation7 + $0x18] sm:$0xff]  ;;  %v998_v14 = vpack.c.bf16 %v90_v11, %v88_v10  ;;  %v192_v16 = vld [vmem:[#allocation7] sm:$0xff] }
  0x4f   :  { %995 = vmatpush1.bf16.msra.mxu0 %v994_v8  ;;  %v1000_v15 = vpack.c.bf16 %v195_v13, %v193_v12  ;;  %v194_v17 = vld [vmem:[#allocation7 + $0x10] sm:$0xff]  ;;  %v197_v18 = vld [vmem:[#allocation7 + $0x28] sm:$0xff]  ;;  %v199_v20 = vld [vmem:[#allocation7 + $0x38] sm:$0xff] }
  0x50   :  { %997 = vmatprep.subr.bf16.mxu0 %v996_v9  ;;  %v1002_v19 = vpack.c.bf16 %v194_v17, %v192_v16  ;;  %v196_v21 = vld [vmem:[#allocation7 + $0x20] sm:$0xff]  ;;  %v198_v22 = vld [vmem:[#allocation7 + $0x30] sm:$0xff]  ;;  %v1004_v23 = vpack.c.bf16 %v199_v20, %v197_v18  ;;  %v201_v24 = vld [vmem:[#allocation7 + $0x48] sm:$0xff] }
  0x51   :  { %1001 = vmatprep.subr.bf16.mxu1 %v1000_v15  ;;  %v203_v25 = vld [vmem:[#allocation7 + $0x58] sm:$0xff]  ;;  %v1006_v26 = vpack.c.bf16 %v198_v22, %v196_v21  ;;  %v82_v27 = vld [vmem:[#allocation2] sm:$0xff]  ;;  %v200_v29 = vld [vmem:[#allocation7 + $0x40] sm:$0xff] }
  0x52   :  { %1003 = vmatpush1.bf16.msra.mxu1 %v1002_v19  ;;  %v1008_v28 = vpack.c.bf16 %v203_v25, %v201_v24  ;;  %v202_v30 = vld [vmem:[#allocation7 + $0x50] sm:$0xff]  ;;  %v205_v31 = vld [vmem:[#allocation7 + $0x68] sm:$0xff]  ;;  %v207_v32 = vld [vmem:[#allocation7 + $0x78] sm:$0xff] }
  0x53   :  { %999 = vmatpush1.bf16.msra.mxu0 %v998_v14  ;;  %1005 = vmatprep.subr.bf16.mxu1 %v1004_v23  ;;  %v1010_v33 = vpack.c.bf16 %v202_v30, %v200_v29  ;;  %v83_v34 = vld [vmem:[#allocation2 + $0x8] sm:$0xff]  ;;  %v1012_v35 = vpack.c.bf16 %v207_v32, %v205_v31  ;;  %v204_v36 = vld [vmem:[#allocation7 + $0x60] sm:$0xff]  ;;  %v206_v37 = vld [vmem:[#allocation7 + $0x70] sm:$0xff] }
  0x54   :  { %v209_v38 = vld [vmem:[#allocation7 + $0x88] sm:$0xff]  ;;  %v211_v39 = vld [vmem:[#allocation7 + $0x98] sm:$0xff]  ;;  %v1014_v40 = vpack.c.bf16 %v206_v37, %v204_v36  ;;  %v208_v42 = vld [vmem:[#allocation7 + $0x80] sm:$0xff] }
  0x55   :  { %v1016_v41 = vpack.c.bf16 %v211_v39, %v209_v38  ;;  %v210_v43 = vld [vmem:[#allocation7 + $0x90] sm:$0xff]  ;;  %v213_v44 = vld [vmem:[#allocation7 + $0xa8] sm:$0xff]  ;;  %v215_v45 = vld [vmem:[#allocation7 + $0xb8] sm:$0xff] }
  0x56   :  { %990 = vmatmul.mubr.msk.f32.vlgmr.msra.gmra.mrb[0].mxu0 %vm104_vm0, %v82_v27  ;;  %1007 = vmatpush1.bf16.msra.mxu1 %v1006_v26  ;;  %v1018_v46 = vpack.c.bf16 %v210_v43, %v208_v42  ;;  %v1020_v47 = vpack.c.bf16 %v215_v45, %v213_v44  ;;  %v212_v48 = vld [vmem:[#allocation7 + $0xa0] sm:$0xff]  ;;  %v214_v49 = vld [vmem:[#allocation7 + $0xb0] sm:$0xff]  ;;  %v217_v50 = vld [vmem:[#allocation7 + $0xc8] sm:$0xff] }
  0x57   :  { %181 = vmatprep.mubr.f32.mxu0 %v1460_v0  ;;  %1009 = vmatprep.subr.bf16.mxu1 %v1008_v28  ;;  %v219_v51 = vld [vmem:[#allocation7 + $0xd8] sm:$0xff]  ;;  %v1022_v52 = vpack.c.bf16 %v214_v49, %v212_v48  ;;  %v216_v54 = vld [vmem:[#allocation7 + $0xc0] sm:$0xff]  ;;  %v218_v55 = vld [vmem:[#allocation7 + $0xd0] sm:$0xff] }
  0x58   :  { %v1024_v53 = vpack.c.bf16 %v219_v51, %v217_v50  ;;  %v221_v56 = vld [vmem:[#allocation7 + $0xe8] sm:$0xff]  ;;  %v223_v57 = vld [vmem:[#allocation7 + $0xf8] sm:$0xff]  ;;  %v1026_v58 = vpack.c.bf16 %v218_v55, %v216_v54  ;;  %v220_v60 = vld [vmem:[#allocation7 + $0xe0] sm:$0xff] }
  0x59   :  { %v1028_v59 = vpack.c.bf16 %v223_v57, %v221_v56  ;;  %v222_v61 = vld [vmem:[#allocation7 + $0xf0] sm:$0xff]  ;;  %v225_v62 = vld [vmem:[#allocation7 + $0x108] sm:$0xff]  ;;  %v227_v63 = vld [vmem:[#allocation7 + $0x118] sm:$0xff] }
  0x5a   :  { %991 = vmatmul.mubr.msk.f32.gmra.mrb[2].mxu0 %vm104_vm0, %v83_v34  ;;  %1011 = vmatpush1.bf16.msra.mxu1 %v1010_v33  ;;  %v1030_v0 = vpack.c.bf16 %v222_v61, %v220_v60  ;;  %v1032_v1 = vpack.c.bf16 %v227_v63, %v225_v62  ;;  %v224_v2 = vld [vmem:[#allocation7 + $0x100] sm:$0xff]  ;;  %v226_v3 = vld [vmem:[#allocation7 + $0x110] sm:$0xff]  ;;  %v229_v4 = vld [vmem:[#allocation7 + $0x128] sm:$0xff] }
  0x5b   :  { %1013 = vmatprep.subr.bf16.mxu1 %v1012_v35  ;;  %v231_v5 = vld [vmem:[#allocation7 + $0x138] sm:$0xff]  ;;  %v1034_v6 = vpack.c.bf16 %v226_v3, %v224_v2  ;;  %v228_v8 = vld [vmem:[#allocation7 + $0x120] sm:$0xff]  ;;  %v230_v9 = vld [vmem:[#allocation7 + $0x130] sm:$0xff] }
  0x5c   :  { %v1036_v7 = vpack.c.bf16 %v231_v5, %v229_v4  ;;  %v233_v10 = vld [vmem:[#allocation7 + $0x148] sm:$0xff]  ;;  %v235_v11 = vld [vmem:[#allocation7 + $0x158] sm:$0xff]  ;;  %v1038_v12 = vpack.c.bf16 %v230_v9, %v228_v8  ;;  %v232_v14 = vld [vmem:[#allocation7 + $0x140] sm:$0xff] }
  0x5d   :  { %v1040_v13 = vpack.c.bf16 %v235_v11, %v233_v10  ;;  %v234_v15 = vld [vmem:[#allocation7 + $0x150] sm:$0xff]  ;;  %v237_v16 = vld [vmem:[#allocation7 + $0x168] sm:$0xff]  ;;  %v239_v17 = vld [vmem:[#allocation7 + $0x178] sm:$0xff] }
  0x5e   :  { %1015 = vmatpush1.bf16.msra.mxu1 %v1014_v40  ;;  %v1042_v18 = vpack.c.bf16 %v234_v15, %v232_v14  ;;  %v1044_v19 = vpack.c.bf16 %v239_v17, %v237_v16  ;;  %v236_v20 = vld [vmem:[#allocation7 + $0x160] sm:$0xff]  ;;  %v238_v21 = vld [vmem:[#allocation7 + $0x170] sm:$0xff]  ;;  %v241_v22 = vld [vmem:[#allocation7 + $0x188] sm:$0xff] }
  0x5f   :  { %1017 = vmatprep.subr.bf16.mxu1 %v1016_v41  ;;  %v243_v23 = vld [vmem:[#allocation7 + $0x198] sm:$0xff]  ;;  %v1046_v24 = vpack.c.bf16 %v238_v21, %v236_v20  ;;  %v240_v26 = vld [vmem:[#allocation7 + $0x180] sm:$0xff]  ;;  %v242_v27 = vld [vmem:[#allocation7 + $0x190] sm:$0xff] }
  0x60   :  { %v1048_v25 = vpack.c.bf16 %v243_v23, %v241_v22  ;;  %v245_v28 = vld [vmem:[#allocation7 + $0x1a8] sm:$0xff]  ;;  %v247_v29 = vld [vmem:[#allocation7 + $0x1b8] sm:$0xff]  ;;  %v1050_v30 = vpack.c.bf16 %v242_v27, %v240_v26  ;;  %v244_v32 = vld [vmem:[#allocation7 + $0x1a0] sm:$0xff] }
  0x61   :  { %v1052_v31 = vpack.c.bf16 %v247_v29, %v245_v28  ;;  %v246_v33 = vld [vmem:[#allocation7 + $0x1b0] sm:$0xff]  ;;  %v249_v34 = vld [vmem:[#allocation7 + $0x1c8] sm:$0xff]  ;;  %v251_v35 = vld [vmem:[#allocation7 + $0x1d8] sm:$0xff] }
  0x62   :  { %1019 = vmatpush1.bf16.msra.mxu1 %v1018_v46  ;;  %v1054_v36 = vpack.c.bf16 %v246_v33, %v244_v32  ;;  %v1056_v37 = vpack.c.bf16 %v251_v35, %v249_v34  ;;  %v248_v38 = vld [vmem:[#allocation7 + $0x1c0] sm:$0xff]  ;;  %v250_v39 = vld [vmem:[#allocation7 + $0x1d0] sm:$0xff]  ;;  %v253_v41 = vld [vmem:[#allocation7 + $0x1e8] sm:$0xff] }
  0x63   :  { %1021 = vmatprep.subr.bf16.mxu1 %v1020_v47  ;;  %v1058_v40 = vpack.c.bf16 %v250_v39, %v248_v38  ;;  %v255_v42 = vld [vmem:[#allocation7 + $0x1f8] sm:$0xff]  ;;  %v252_v44 = vld [vmem:[#allocation7 + $0x1e0] sm:$0xff]  ;;  %v254_v45 = vld [vmem:[#allocation7 + $0x1f0] sm:$0xff] }
  0x64   :  { %v1060_v43 = vpack.c.bf16 %v255_v42, %v253_v41  ;;  %v1062_v46 = vpack.c.bf16 %v254_v45, %v252_v44  ;;  %v350_v47 = vld [vmem:[#allocation8 + $0x8] sm:$0xff]  ;;  %v352_v49 = vld [vmem:[#allocation8 + $0x18] sm:$0xff]  ;;  %v373_v60 = vld [vmem:[#allocation8 + $0xc0] sm:$0xff] }
  0x65   :  { %v358_v48 = vld [vmem:[#allocation8 + $0x48] sm:$0xff]  ;;  %v360_v51 = vld [vmem:[#allocation8 + $0x58] sm:$0xff]  ;;  %v389_v2 = vld [vmem:[#allocation8 + $0x140] sm:$0xff] }
  0x66   :  { %1023 = vmatpush1.bf16.msra.mxu1 %v1022_v52  ;;  %v1064_v50 = vpack.c.bf16 %v358_v48, %v350_v47  ;;  %v349_v52 = vld [vmem:[#allocation8] sm:$0xff]  ;;  %v1128_v54 = vpack.c.bf16 %v360_v51, %v352_v49  ;;  %v366_v56 = vld [vmem:[#allocation8 + $0x88] sm:$0xff] }
  0x67   :  { %1025 = vmatprep.subr.bf16.mxu1 %v1024_v53  ;;  %v357_v53 = vld [vmem:[#allocation8 + $0x40] sm:$0xff]  ;;  %v374_v57 = vld [vmem:[#allocation8 + $0xc8] sm:$0xff] }
  0x68   :  { %v1066_v55 = vpack.c.bf16 %v357_v53, %v349_v52  ;;  %1065 = vmatprep.subr.bf16.mxu0 %v1064_v50  ;;  %v382_v62 = vld [vmem:[#allocation8 + $0x108] sm:$0xff]  ;;  %v405_v8 = vld [vmem:[#allocation8 + $0x1c0] sm:$0xff] }
  0x69   :  { %v390_v63 = vld [vmem:[#allocation8 + $0x148] sm:$0xff]  ;;  %v421_v14 = vld [vmem:[#allocation8 + $0x240] sm:$0xff] }
  0x6a   :  { %1027 = vmatpush1.bf16.msra.mxu1 %v1026_v58  ;;  %1067 = vmatpush1.bf16.msra.mxu0 %v1066_v55  ;;  %v1068_v58 = vpack.c.bf16 %v374_v57, %v366_v56  ;;  %v398_v4 = vld [vmem:[#allocation8 + $0x188] sm:$0xff]  ;;  %v437_v20 = vld [vmem:[#allocation8 + $0x2c0] sm:$0xff] }
  0x6b   :  { %1029 = vmatprep.subr.bf16.mxu1 %v1028_v59  ;;  %v365_v59 = vld [vmem:[#allocation8 + $0x80] sm:$0xff]  ;;  %v406_v5 = vld [vmem:[#allocation8 + $0x1c8] sm:$0xff] }
  0x6c   :  { %v1070_v61 = vpack.c.bf16 %v373_v60, %v365_v59  ;;  %1069 = vmatprep.subr.bf16.mxu0 %v1068_v58  ;;  %v414_v9 = vld [vmem:[#allocation8 + $0x208] sm:$0xff]  ;;  %v453_v26 = vld [vmem:[#allocation8 + $0x340] sm:$0xff] }
  0x6d   :  { %v422_v10 = vld [vmem:[#allocation8 + $0x248] sm:$0xff]  ;;  %v469_v32 = vld [vmem:[#allocation8 + $0x3c0] sm:$0xff] }
  0x6e   :  { %1031 = vmatpush1.bf16.msra.mxu1 %v1030_v0  ;;  %v1072_v0 = vpack.c.bf16 %v390_v63, %v382_v62  ;;  %1071 = vmatpush1.bf16.msra.mxu0 %v1070_v61  ;;  %v430_v15 = vld [vmem:[#allocation8 + $0x288] sm:$0xff]  ;;  %v485_v38 = vld [vmem:[#allocation8 + $0x440] sm:$0xff] }
  0x6f   :  { %1033 = vmatprep.subr.bf16.mxu1 %v1032_v1  ;;  %v381_v1 = vld [vmem:[#allocation8 + $0x100] sm:$0xff]  ;;  %v438_v16 = vld [vmem:[#allocation8 + $0x2c8] sm:$0xff] }
  0x70   :  { %v1074_v3 = vpack.c.bf16 %v389_v2, %v381_v1  ;;  %1073 = vmatprep.subr.bf16.mxu0 %v1072_v0  ;;  %v446_v21 = vld [vmem:[#allocation8 + $0x308] sm:$0xff]  ;;  %v501_v44 = vld [vmem:[#allocation8 + $0x4c0] sm:$0xff] }
  0x71   :  { %v454_v22 = vld [vmem:[#allocation8 + $0x348] sm:$0xff]  ;;  %v509_v49 = vld [vmem:[#allocation8 + $0x500] sm:$0xff] }
  0x72   :  { %1035 = vmatpush1.bf16.msra.mxu1 %v1034_v6  ;;  %v1076_v6 = vpack.c.bf16 %v406_v5, %v398_v4  ;;  %1075 = vmatpush1.bf16.msra.mxu0 %v1074_v3  ;;  %v462_v27 = vld [vmem:[#allocation8 + $0x388] sm:$0xff]  ;;  %v517_v50 = vld [vmem:[#allocation8 + $0x540] sm:$0xff] }
  0x73   :  { %1037 = vmatprep.subr.bf16.mxu1 %v1036_v7  ;;  %v397_v7 = vld [vmem:[#allocation8 + $0x180] sm:$0xff]  ;;  %v470_v28 = vld [vmem:[#allocation8 + $0x3c8] sm:$0xff]  ;;  %v1106_v53 = vpack.c.bf16 %v517_v50, %v509_v49  ;;  %v399_v49 = vld [vmem:[#allocation8 + $0x190] sm:$0xff] }
  0x74   :  { %v1078_v11 = vpack.c.bf16 %v405_v8, %v397_v7  ;;  %1077 = vmatprep.subr.bf16.mxu0 %v1076_v6  ;;  %v478_v33 = vld [vmem:[#allocation8 + $0x408] sm:$0xff]  ;;  %v525_v55 = vld [vmem:[#allocation8 + $0x580] sm:$0xff]  ;;  %v407_v50 = vld [vmem:[#allocation8 + $0x1d0] sm:$0xff] }
  0x75   :  { %v486_v34 = vld [vmem:[#allocation8 + $0x448] sm:$0xff]  ;;  %v533_v56 = vld [vmem:[#allocation8 + $0x5c0] sm:$0xff] }
  0x76   :  { %1039 = vmatpush1.bf16.msra.mxu1 %v1038_v12  ;;  %v1080_v12 = vpack.c.bf16 %v422_v10, %v414_v9  ;;  %1079 = vmatpush1.bf16.msra.mxu0 %v1078_v11  ;;  %v494_v39 = vld [vmem:[#allocation8 + $0x488] sm:$0xff]  ;;  %v1110_v59 = vpack.c.bf16 %v533_v56, %v525_v55  ;;  %v541_v61 = vld [vmem:[#allocation8 + $0x600] sm:$0xff]  ;;  %v415_v55 = vld [vmem:[#allocation8 + $0x210] sm:$0xff] }
  0x77   :  { %1041 = vmatprep.subr.bf16.mxu1 %v1040_v13  ;;  %v413_v13 = vld [vmem:[#allocation8 + $0x200] sm:$0xff]  ;;  %v510_v45 = vld [vmem:[#allocation8 + $0x508] sm:$0xff]  ;;  %v423_v56 = vld [vmem:[#allocation8 + $0x250] sm:$0xff] }
  0x78   :  { %v1082_v17 = vpack.c.bf16 %v421_v14, %v413_v13  ;;  %1081 = vmatprep.subr.bf16.mxu0 %v1080_v12  ;;  %v526_v51 = vld [vmem:[#allocation8 + $0x588] sm:$0xff]  ;;  %v549_v62 = vld [vmem:[#allocation8 + $0x640] sm:$0xff]  ;;  %v94_v12 = vlaneseq }
  0x79   :  { %v534_v52 = vld [vmem:[#allocation8 + $0x5c8] sm:$0xff]  ;;  %v1114_v1 = vpack.c.bf16 %v549_v62, %v541_v61  ;;  %v557_v3 = vld [vmem:[#allocation8 + $0x680] sm:$0xff]  ;;  %v431_v61 = vld [vmem:[#allocation8 + $0x290] sm:$0xff] }
  0x7a   :  { %1043 = vmatpush1.bf16.msra.mxu1 %v1042_v18  ;;  %v1084_v18 = vpack.c.bf16 %v438_v16, %v430_v15  ;;  %1083 = vmatpush1.bf16.msra.mxu0 %v1082_v17  ;;  %v542_v57 = vld [vmem:[#allocation8 + $0x608] sm:$0xff]  ;;  %v565_v4 = vld [vmem:[#allocation8 + $0x6c0] sm:$0xff]  ;;  %v1568_v13 = vshrl.u32 %v94_v12, 7  ;;  %v92_v15 = vld [vmem:[%s1632_s2] sm:$0x3] }
  0x7b   :  { %1045 = vmatprep.subr.bf16.mxu1 %v1044_v19  ;;  %v429_v19 = vld [vmem:[#allocation8 + $0x280] sm:$0xff]  ;;  %v550_v58 = vld [vmem:[#allocation8 + $0x648] sm:$0xff]  ;;  %v1118_v7 = vpack.c.bf16 %v565_v4, %v557_v3  ;;  %v439_v62 = vld [vmem:[#allocation8 + $0x2d0] sm:$0xff] }
  0x7c   :  { %v1086_v23 = vpack.c.bf16 %v437_v20, %v429_v19  ;;  %1085 = vmatprep.subr.bf16.mxu0 %v1084_v18  ;;  %v1112_v60 = vpack.c.bf16 %v550_v58, %v542_v57  ;;  %v558_v63 = vld [vmem:[#allocation8 + $0x688] sm:$0xff]  ;;  %v573_v9 = vld [vmem:[#allocation8 + $0x700] sm:$0xff]  ;;  %v1571_v14 = vsub.s32 0, %v1568_v13  ;;  %v1577_v16 = vsub.s32 1, %v1568_v13  ;;  %v432_v57 = vld [vmem:[#allocation8 + $0x298] sm:$0xff] }
  0x7d   :  { %v566_v0 = vld [vmem:[#allocation8 + $0x6c8] sm:$0xff]  ;;  %v581_v10 = vld [vmem:[#allocation8 + $0x740] sm:$0xff]  ;;  %v440_v58 = vld [vmem:[#allocation8 + $0x2d8] sm:$0xff] }
  0x7e   :  { %1047 = vmatpush1.bf16.msra.mxu1 %v1046_v24  ;;  %v1088_v24 = vpack.c.bf16 %v454_v22, %v446_v21  ;;  %1087 = vmatpush1.bf16.msra.mxu0 %v1086_v23  ;;  %v1116_v2 = vpack.c.bf16 %v566_v0, %v558_v63  ;;  %v574_v5 = vld [vmem:[#allocation8 + $0x708] sm:$0xff]  ;;  %v1122_v11 = vpack.c.bf16 %v581_v10, %v573_v9  ;;  %v351_v22 = vld [vmem:[#allocation8 + $0x10] sm:$0xff]  ;;  %v448_v63 = vld [vmem:[#allocation8 + $0x318] sm:$0xff] }
  0x7f   :  { %1049 = vmatprep.subr.bf16.mxu1 %v1048_v25  ;;  %v445_v25 = vld [vmem:[#allocation8 + $0x300] sm:$0xff]  ;;  %v582_v6 = vld [vmem:[#allocation8 + $0x748] sm:$0xff]  ;;  %v97_v17 = vrot.slane %v92_v15, %v1571_v14  ;;  %v101_v18 = vrot.slane %v92_v15, %v1577_v16  ;;  %v359_v23 = vld [vmem:[#allocation8 + $0x50] sm:$0xff] }
  0x80   :  { %v1090_v29 = vpack.c.bf16 %v453_v26, %v445_v25  ;;  %1089 = vmatprep.subr.bf16.mxu0 %v1088_v24  ;;  %v1120_v8 = vpack.c.bf16 %v582_v6, %v574_v5  ;;  %v368_v25 = vld [vmem:[#allocation8 + $0x98] sm:$0xff]  ;;  %v447_v3 = vld [vmem:[#allocation8 + $0x310] sm:$0xff] }
  0x81   :  { %v376_v26 = vld [vmem:[#allocation8 + $0xd8] sm:$0xff]  ;;  %v455_v4 = vld [vmem:[#allocation8 + $0x350] sm:$0xff] }
  0x82   :  { %1051 = vmatpush1.bf16.msra.mxu1 %v1050_v30  ;;  %v1092_v30 = vpack.c.bf16 %v470_v28, %v462_v27  ;;  %1091 = vmatpush1.bf16.msra.mxu0 %v1090_v29  ;;  %v1130_v29 = vpack.c.bf16 %v359_v23, %v351_v22  ;;  %v456_v0 = vld [vmem:[#allocation8 + $0x358] sm:$0xff]  ;;  %v463_v9 = vld [vmem:[#allocation8 + $0x390] sm:$0xff] }
  0x83   :  { %1053 = vmatprep.subr.bf16.mxu1 %v1052_v31  ;;  %v461_v31 = vld [vmem:[#allocation8 + $0x380] sm:$0xff]  ;;  %v464_v5 = vld [vmem:[#allocation8 + $0x398] sm:$0xff]  ;;  %v471_v10 = vld [vmem:[#allocation8 + $0x3d0] sm:$0xff] }
  0x84   :  { %v1094_v35 = vpack.c.bf16 %v469_v32, %v461_v31  ;;  %1093 = vmatprep.subr.bf16.mxu0 %v1092_v30  ;;  %v472_v6 = vld [vmem:[#allocation8 + $0x3d8] sm:$0xff]  ;;  %v1158_v15 = vpack.c.bf16 %v471_v10, %v463_v9 }
  0x85   :  { %v488_v12 = vld [vmem:[#allocation8 + $0x458] sm:$0xff] }
  0x86   :  { %1055 = vmatpush1.bf16.msra.mxu1 %v1054_v36  ;;  %v1096_v36 = vpack.c.bf16 %v486_v34, %v478_v33  ;;  %1095 = vmatpush1.bf16.msra.mxu0 %v1094_v35  ;;  %v1132_v33 = vpack.c.bf16 %v376_v26, %v368_v25  ;;  %v367_v34 = vld [vmem:[#allocation8 + $0x90] sm:$0xff]  ;;  %v512_v26 = vld [vmem:[#allocation8 + $0x518] sm:$0xff] }
  0x87   :  { %1057 = vmatprep.subr.bf16.mxu1 %v1056_v37  ;;  %v477_v37 = vld [vmem:[#allocation8 + $0x400] sm:$0xff]  ;;  %v375_v35 = vld [vmem:[#allocation8 + $0xd0] sm:$0xff]  ;;  %v364_v9 = vld [vmem:[#allocation8 + $0x78] sm:$0xff] }
  0x88   :  { %v1098_v41 = vpack.c.bf16 %v485_v38, %v477_v37  ;;  %1097 = vmatprep.subr.bf16.mxu0 %v1096_v36  ;;  %v384_v37 = vld [vmem:[#allocation8 + $0x118] sm:$0xff]  ;;  %v503_v25 = vld [vmem:[#allocation8 + $0x4d0] sm:$0xff] }
  0x89   :  { %v392_v38 = vld [vmem:[#allocation8 + $0x158] sm:$0xff] }
  0x8a   :  { %1059 = vmatpush1.bf16.msra.mxu1 %v1058_v40  ;;  %v502_v40 = vld [vmem:[#allocation8 + $0x4c8] sm:$0xff]  ;;  %1099 = vmatpush1.bf16.msra.mxu0 %v1098_v41  ;;  %v1134_v41 = vpack.c.bf16 %v375_v35, %v367_v34 }
  0x8b   :  { %1061 = vmatprep.subr.bf16.mxu1 %v1060_v43  ;;  %v1100_v42 = vpack.c.bf16 %v502_v40, %v494_v39  ;;  %v493_v43 = vld [vmem:[#allocation8 + $0x480] sm:$0xff] }
  0x8c   :  { %v1102_v47 = vpack.c.bf16 %v501_v44, %v493_v43  ;;  %v383_v43 = vld [vmem:[#allocation8 + $0x110] sm:$0xff] }
  0x8d   :  { %1101 = vmatprep.subr.bf16.mxu0 %v1100_v42  ;;  %v1136_v42 = vpack.c.bf16 %v392_v38, %v384_v37  ;;  %v391_v44 = vld [vmem:[#allocation8 + $0x150] sm:$0xff]  ;;  %v544_v38 = vld [vmem:[#allocation8 + $0x618] sm:$0xff] }
  0x8e   :  { %1063 = vmatpush1.bf16.msra.mxu1 %v1062_v46  ;;  %v518_v46 = vld [vmem:[#allocation8 + $0x548] sm:$0xff]  ;;  %1103 = vmatpush1.bf16.msra.mxu0 %v1102_v47  ;;  %v1138_v47 = vpack.c.bf16 %v391_v44, %v383_v43  ;;  %v535_v37 = vld [vmem:[#allocation8 + $0x5d0] sm:$0xff]  ;;  %v560_v44 = vld [vmem:[#allocation8 + $0x698] sm:$0xff] }
  0x8f   :  { %1129 = vmatprep.subr.bf16.mxu1 %v1128_v54  ;;  %v1104_v48 = vpack.c.bf16 %v518_v46, %v510_v45  ;;  %v1108_v54 = vpack.c.bf16 %v534_v52, %v526_v51  ;;  %v400_v45 = vld [vmem:[#allocation8 + $0x198] sm:$0xff]  ;;  %v551_v43 = vld [vmem:[#allocation8 + $0x650] sm:$0xff] }
  0x90   :  { %v408_v46 = vld [vmem:[#allocation8 + $0x1d8] sm:$0xff] }
  0x91   :  { %1105 = vmatprep.subr.bf16.mxu0 %v1104_v48  ;;  %v1140_v48 = vpack.c.bf16 %v408_v46, %v400_v45  ;;  %v416_v51 = vld [vmem:[#allocation8 + $0x218] sm:$0xff] }
  0x92   :  { %1107 = vmatpush1.bf16.msra.mxu0 %v1106_v53  ;;  %v424_v52 = vld [vmem:[#allocation8 + $0x258] sm:$0xff]  ;;  %v1142_v53 = vpack.c.bf16 %v407_v50, %v399_v49  ;;  %v567_v49 = vld [vmem:[#allocation8 + $0x6d0] sm:$0xff] }
  0x93   :  { %1109 = vmatprep.subr.bf16.mxu0 %v1108_v54  ;;  %v1144_v54 = vpack.c.bf16 %v424_v52, %v416_v51  ;;  %v568_v45 = vld [vmem:[#allocation8 + $0x6d8] sm:$0xff] }
  0x94   :  { %v576_v50 = vld [vmem:[#allocation8 + $0x718] sm:$0xff] }
  0x95   :  { %v584_v51 = vld [vmem:[#allocation8 + $0x758] sm:$0xff] }
  0x96   :  { %1111 = vmatpush1.bf16.msra.mxu0 %v1110_v59  ;;  %v1146_v59 = vpack.c.bf16 %v423_v56, %v415_v55  ;;  %v583_v55 = vld [vmem:[#allocation8 + $0x750] sm:$0xff] }
  0x97   :  { %1113 = vmatprep.subr.bf16.mxu0 %v1112_v60  ;;  %v1148_v60 = vpack.c.bf16 %v440_v58, %v432_v57  ;;  %v590_v57 = vld [vmem:[#allocation8 + $0x788] sm:$0xff] }
  0x98   :  { %v598_v58 = vld [vmem:[#allocation8 + $0x7c8] sm:$0xff] }
  0x9a   :  { %1115 = vmatpush1.bf16.msra.mxu0 %v1114_v1  ;;  %v1150_v1 = vpack.c.bf16 %v439_v62, %v431_v61  ;;  %v600_v61 = vld [vmem:[#allocation8 + $0x7d8] sm:$0xff]  ;;  %v589_v62 = vld [vmem:[#allocation8 + $0x780] sm:$0xff] }
  0x9b   :  { %1117 = vmatprep.subr.bf16.mxu0 %v1116_v2  ;;  %v1152_v2 = vpack.c.bf16 %v456_v0, %v448_v63  ;;  %v597_v63 = vld [vmem:[#allocation8 + $0x7c0] sm:$0xff] }
  0x9e   :  { %1119 = vmatpush1.bf16.msra.mxu0 %v1118_v7  ;;  %v1154_v7 = vpack.c.bf16 %v455_v4, %v447_v3  ;;  %v599_v3 = vld [vmem:[#allocation8 + $0x7d0] sm:$0xff] }
  0x9f   :  { %1121 = vmatprep.subr.bf16.mxu0 %v1120_v8  ;;  %v1156_v8 = vpack.c.bf16 %v472_v6, %v464_v5  ;;  %v354_v5 = vld [vmem:[#allocation8 + $0x28] sm:$0xff] }
  0xa0   :  { %v362_v6 = vld [vmem:[#allocation8 + $0x68] sm:$0xff] }
  0xa2   :  { %1123 = vmatpush1.bf16.msra.mxu0 %v1122_v11  ;;  %v480_v11 = vld [vmem:[#allocation8 + $0x418] sm:$0xff] }
 0x129   :  { %v177_v19 = vpop.f32.mrb[0].mxu0 }
 0x12a   :  { %v178_v20 = vadd.f32 %v177_v19, %v97_v17  ;;  %v179_v21 = vpop.f32.mrb[1].mxu0  ;;  %v487_v19 = vld [vmem:[#allocation8 + $0x450] sm:$0xff] }
 0x12b   :  { %v180_v24 = vadd.f32 %v179_v21, %v101_v18  ;;  %v504_v21 = vld [vmem:[#allocation8 + $0x4d8] sm:$0xff] }
 0x12c   :  { %v188_v30 = vmax.f32 %v178_v20, 0.0  ;;  %v496_v20 = vld [vmem:[#allocation8 + $0x498] sm:$0xff] }
 0x12d   :  { %v183_v27 = vpop.f32.mrb[2].mxu0  ;;  %v189_v28 = vmax.f32 %v180_v24, 0.0  ;;  %v1164_v23 = vpack.c.bf16 %v504_v21, %v496_v20  ;;  %v495_v24 = vld [vmem:[#allocation8 + $0x490] sm:$0xff] }
 0x12e   :  { %v184_v31 = vadd.f32 %v183_v27, %v97_v17  ;;  %v185_v32 = vpop.f32.mrb[3].mxu0  ;;  %v1160_v17 = vpack.c.bf16 %v488_v12, %v480_v11  ;;  %v520_v27 = vld [vmem:[#allocation8 + $0x558] sm:$0xff]  ;;  %v256_v11 = vld [vmem:[%s1634_s4] sm:$0x3] }
 0x12f   :  { %v186_v36 = vadd.f32 %v185_v32, %v101_v18  ;;  %332 = vmatprep.mubr.f32.mxu1 %v189_v28  ;;  %v479_v18 = vld [vmem:[#allocation8 + $0x410] sm:$0xff]  ;;  %v1166_v28 = vpack.c.bf16 %v503_v25, %v495_v24  ;;  %v528_v32 = vld [vmem:[#allocation8 + $0x598] sm:$0xff]  ;;  %v261_v12 = vrot.slane %v256_v11, %v1571_v14  ;;  %v370_v24 = vld [vmem:[#allocation8 + $0xa8] sm:$0xff] }
 0x130   :  { %v190_v39 = vmax.f32 %v184_v31, 0.0  ;;  %333 = vmatmul.mubr.f32.vlgmr.msra.gmra.mrb[0].mxu1 %v188_v30  ;;  %v1162_v22 = vpack.c.bf16 %v487_v19, %v479_v18  ;;  %v511_v30 = vld [vmem:[#allocation8 + $0x510] sm:$0xff]  ;;  %v353_v18 = vld [vmem:[#allocation8 + $0x20] sm:$0xff] }
 0x131   :  { %v191_v40 = vmax.f32 %v186_v36, 0.0  ;;  %1131 = vmatpush1.bf16.msra.mxu1 %v1130_v29  ;;  %v1168_v29 = vpack.c.bf16 %v520_v27, %v512_v26  ;;  %v519_v31 = vld [vmem:[#allocation8 + $0x550] sm:$0xff]  ;;  %v361_v19 = vld [vmem:[#allocation8 + $0x60] sm:$0xff]  ;;  %v378_v26 = vld [vmem:[#allocation8 + $0xe8] sm:$0xff] }
 0x132   :  { %1133 = vmatprep.subr.bf16.mxu1 %v1132_v33  ;;  %v536_v33 = vld [vmem:[#allocation8 + $0x5d8] sm:$0xff]  ;;  %v1170_v34 = vpack.c.bf16 %v519_v31, %v511_v30  ;;  %v527_v36 = vld [vmem:[#allocation8 + $0x590] sm:$0xff]  ;;  %v1194_v31 = vpack.c.bf16 %v361_v19, %v353_v18 }
 0x133   :  { %338 = vmatprep.mubr.f32.mxu1 %v191_v40  ;;  %v1172_v35 = vpack.c.bf16 %v536_v33, %v528_v32  ;;  %v1174_v40 = vpack.c.bf16 %v535_v37, %v527_v36  ;;  %v372_v27 = vld [vmem:[#allocation8 + $0xb8] sm:$0xff]  ;;  %v369_v33 = vld [vmem:[#allocation8 + $0xa0] sm:$0xff]  ;;  %v1196_v37 = vpack.c.bf16 %v378_v26, %v370_v24  ;;  %v419_v18 = vld [vmem:[#allocation8 + $0x230] sm:$0xff] }
 0x134   :  { %339 = vmatmul.mubr.f32.gmra.mrb[2].mxu1 %v190_v39  ;;  %v552_v39 = vld [vmem:[#allocation8 + $0x658] sm:$0xff]  ;;  %v427_v19 = vld [vmem:[#allocation8 + $0x270] sm:$0xff]  ;;  %v433_v26 = vld [vmem:[#allocation8 + $0x2a0] sm:$0xff] }
 0x135   :  { %1135 = vmatpush1.bf16.msra.mxu1 %v1134_v41  ;;  %v1176_v41 = vpack.c.bf16 %v552_v39, %v544_v38  ;;  %v377_v39 = vld [vmem:[#allocation8 + $0xe0] sm:$0xff] }
 0x136   :  { %1137 = vmatprep.subr.bf16.mxu1 %v1136_v42  ;;  %v543_v42 = vld [vmem:[#allocation8 + $0x610] sm:$0xff] }
 0x137   :  { %v1178_v46 = vpack.c.bf16 %v551_v43, %v543_v42  ;;  %v386_v43 = vld [vmem:[#allocation8 + $0x128] sm:$0xff] }
 0x139   :  { %1139 = vmatpush1.bf16.msra.mxu1 %v1138_v47  ;;  %v1180_v47 = vpack.c.bf16 %v568_v45, %v560_v44  ;;  %v394_v45 = vld [vmem:[#allocation8 + $0x168] sm:$0xff] }
 0x13a   :  { %1141 = vmatprep.subr.bf16.mxu1 %v1140_v48  ;;  %v559_v48 = vld [vmem:[#allocation8 + $0x690] sm:$0xff] }
 0x13b   :  { %v1182_v52 = vpack.c.bf16 %v567_v49, %v559_v48  ;;  %v1198_v49 = vpack.c.bf16 %v377_v39, %v369_v33  ;;  %v458_v33 = vld [vmem:[#allocation8 + $0x368] sm:$0xff]  ;;  %v449_v39 = vld [vmem:[#allocation8 + $0x320] sm:$0xff] }
 0x13d   :  { %1143 = vmatpush1.bf16.msra.mxu1 %v1142_v53  ;;  %v1184_v53 = vpack.c.bf16 %v584_v51, %v576_v50  ;;  %v385_v51 = vld [vmem:[#allocation8 + $0x120] sm:$0xff] }
 0x13e   :  { %1145 = vmatprep.subr.bf16.mxu1 %v1144_v54  ;;  %v575_v54 = vld [vmem:[#allocation8 + $0x710] sm:$0xff] }
 0x13f   :  { %v1186_v56 = vpack.c.bf16 %v583_v55, %v575_v54  ;;  %v395_v54 = vld [vmem:[#allocation8 + $0x170] sm:$0xff]  ;;  %v402_v55 = vld [vmem:[#allocation8 + $0x1a8] sm:$0xff] }
 0x141   :  { %1147 = vmatpush1.bf16.msra.mxu1 %v1146_v59  ;;  %v592_v59 = vld [vmem:[#allocation8 + $0x798] sm:$0xff] }
 0x142   :  { %1149 = vmatprep.subr.bf16.mxu1 %v1148_v60  ;;  %v1124_v60 = vpack.c.bf16 %v598_v58, %v590_v57  ;;  %v1188_v0 = vpack.c.bf16 %v600_v61, %v592_v59  ;;  %v410_v58 = vld [vmem:[#allocation8 + $0x1e8] sm:$0xff]  ;;  %v404_v59 = vld [vmem:[#allocation8 + $0x1b8] sm:$0xff] }
 0x144   :  { %1125 = vmatprep.subr.bf16.mxu0 %v1124_v60  ;;  %v412_v60 = vld [vmem:[#allocation8 + $0x1f8] sm:$0xff] }
 0x145   :  { %1151 = vmatpush1.bf16.msra.mxu1 %v1150_v1  ;;  %v1126_v1 = vpack.c.bf16 %v597_v63, %v589_v62  ;;  %v401_v63 = vld [vmem:[#allocation8 + $0x1a0] sm:$0xff] }
 0x146   :  { %1153 = vmatprep.subr.bf16.mxu1 %v1152_v2  ;;  %v591_v2 = vld [vmem:[#allocation8 + $0x790] sm:$0xff] }
 0x147   :  { %v1190_v4 = vpack.c.bf16 %v599_v3, %v591_v2  ;;  %1127 = vmatpush1.bf16.msra.mxu0 %v1126_v1  ;;  %v1204_v1 = vpack.c.bf16 %v410_v58, %v402_v55  ;;  %v1268_v2 = vpack.c.bf16 %v412_v60, %v404_v59  ;;  %v403_v3 = vld [vmem:[#allocation8 + $0x1b0] sm:$0xff]  ;;  %v482_v59 = vld [vmem:[#allocation8 + $0x428] sm:$0xff] }
 0x148   :  { %v475_v58 = vld [vmem:[#allocation8 + $0x3f0] sm:$0xff]  ;;  %v490_v60 = vld [vmem:[#allocation8 + $0x468] sm:$0xff] }
 0x149   :  { %1155 = vmatpush1.bf16.msra.mxu1 %v1154_v7  ;;  %v356_v7 = vld [vmem:[#allocation8 + $0x38] sm:$0xff] }
 0x14a   :  { %1157 = vmatprep.subr.bf16.mxu1 %v1156_v8  ;;  %v1192_v8 = vpack.c.bf16 %v362_v6, %v354_v5  ;;  %v1256_v10 = vpack.c.bf16 %v364_v9, %v356_v7  ;;  %v418_v5 = vld [vmem:[#allocation8 + $0x228] sm:$0xff]  ;;  %v420_v7 = vld [vmem:[#allocation8 + $0x238] sm:$0xff] }
 0x14b   :  { %v426_v6 = vld [vmem:[#allocation8 + $0x268] sm:$0xff] }
 0x14c   :  { %1193 = vmatprep.subr.bf16.mxu0 %v1192_v8  ;;  %v428_v8 = vld [vmem:[#allocation8 + $0x278] sm:$0xff] }
 0x14d   :  { %1159 = vmatpush1.bf16.msra.mxu1 %v1158_v15  ;;  %v265_v15 = vrot.slane %v256_v11, %v1577_v16  ;;  %v417_v11 = vld [vmem:[#allocation8 + $0x220] sm:$0xff] }
 0x14e   :  { %1161 = vmatprep.subr.bf16.mxu1 %v1160_v17 }
 0x151   :  { %1163 = vmatpush1.bf16.msra.mxu1 %v1162_v22  ;;  %v355_v22 = vld [vmem:[#allocation8 + $0x30] sm:$0xff] }
 0x152   :  { %1165 = vmatprep.subr.bf16.mxu1 %v1164_v23  ;;  %v363_v23 = vld [vmem:[#allocation8 + $0x70] sm:$0xff] }
 0x153   :  { %v1258_v32 = vpack.c.bf16 %v363_v23, %v355_v22  ;;  %v436_v22 = vld [vmem:[#allocation8 + $0x2b8] sm:$0xff] }
 0x154   :  { %v444_v23 = vld [vmem:[#allocation8 + $0x2f8] sm:$0xff] }
 0x155   :  { %1167 = vmatpush1.bf16.msra.mxu1 %v1166_v28  ;;  %v380_v28 = vld [vmem:[#allocation8 + $0xf8] sm:$0xff] }
 0x156   :  { %1169 = vmatprep.subr.bf16.mxu1 %v1168_v29  ;;  %v1260_v38 = vpack.c.bf16 %v380_v28, %v372_v27  ;;  %v441_v27 = vld [vmem:[#allocation8 + $0x2e0] sm:$0xff] }
 0x159   :  { %1171 = vmatpush1.bf16.msra.mxu1 %v1170_v34 }
 0x15a   :  { %1173 = vmatprep.subr.bf16.mxu1 %v1172_v35 }
 0x15d   :  { %1175 = vmatpush1.bf16.msra.mxu1 %v1174_v40  ;;  %v371_v40 = vld [vmem:[#allocation8 + $0xb0] sm:$0xff] }
 0x15e   :  { %1177 = vmatprep.subr.bf16.mxu1 %v1176_v41  ;;  %v379_v41 = vld [vmem:[#allocation8 + $0xf0] sm:$0xff] }
 0x15f   :  { %v1262_v50 = vpack.c.bf16 %v379_v41, %v371_v40  ;;  %v457_v40 = vld [vmem:[#allocation8 + $0x360] sm:$0xff] }
 0x161   :  { %1179 = vmatpush1.bf16.msra.mxu1 %v1178_v46  ;;  %v388_v46 = vld [vmem:[#allocation8 + $0x138] sm:$0xff] }
 0x162   :  { %1181 = vmatprep.subr.bf16.mxu1 %v1180_v47  ;;  %v396_v47 = vld [vmem:[#allocation8 + $0x178] sm:$0xff] }
 0x163   :  { %v1264_v57 = vpack.c.bf16 %v396_v47, %v388_v46  ;;  %v466_v46 = vld [vmem:[#allocation8 + $0x3a8] sm:$0xff] }
 0x164   :  { %v474_v47 = vld [vmem:[#allocation8 + $0x3e8] sm:$0xff] }
 0x165   :  { %1183 = vmatpush1.bf16.msra.mxu1 %v1182_v52  ;;  %v393_v52 = vld [vmem:[#allocation8 + $0x160] sm:$0xff]  ;;  %v1220_v55 = vpack.c.bf16 %v474_v47, %v466_v46  ;;  %v531_v46 = vld [vmem:[#allocation8 + $0x5b0] sm:$0xff] }
 0x166   :  { %1185 = vmatprep.subr.bf16.mxu1 %v1184_v53  ;;  %v387_v53 = vld [vmem:[#allocation8 + $0x130] sm:$0xff]  ;;  %v1202_v61 = vpack.c.bf16 %v393_v52, %v385_v51  ;;  %v1218_v51 = vpack.c.bf16 %v457_v40, %v449_v39 }
 0x167   :  { %v1266_v62 = vpack.c.bf16 %v395_v54, %v387_v53  ;;  %v465_v53 = vld [vmem:[#allocation8 + $0x3a0] sm:$0xff]  ;;  %v539_v47 = vld [vmem:[#allocation8 + $0x5f0] sm:$0xff] }
 0x168   :  { %v473_v54 = vld [vmem:[#allocation8 + $0x3e0] sm:$0xff] }
 0x169   :  { %1187 = vmatpush1.bf16.msra.mxu1 %v1186_v56  ;;  %v1200_v56 = vpack.c.bf16 %v394_v45, %v386_v43  ;;  %v451_v43 = vld [vmem:[#allocation8 + $0x330] sm:$0xff] }
 0x16a   :  { %1189 = vmatprep.subr.bf16.mxu1 %v1188_v0  ;;  %v409_v0 = vld [vmem:[#allocation8 + $0x1e0] sm:$0xff]  ;;  %v459_v45 = vld [vmem:[#allocation8 + $0x370] sm:$0xff] }
 0x16b   :  { %v1206_v9 = vpack.c.bf16 %v409_v0, %v401_v63  ;;  %v1282_v52 = vpack.c.bf16 %v459_v45, %v451_v43  ;;  %v1222_v63 = vpack.c.bf16 %v473_v54, %v465_v53  ;;  %v1302_v54 = vpack.c.bf16 %v539_v47, %v531_v46 }
 0x16d   :  { %1191 = vmatpush1.bf16.msra.mxu1 %v1190_v4  ;;  %v411_v4 = vld [vmem:[#allocation8 + $0x1f0] sm:$0xff] }
 0x16e   :  { %1257 = vmatprep.subr.bf16.mxu1 %v1256_v10  ;;  %v1270_v10 = vpack.c.bf16 %v411_v4, %v403_v3  ;;  %v1224_v3 = vpack.c.bf16 %v490_v60, %v482_v59  ;;  %v547_v59 = vld [vmem:[#allocation8 + $0x630] sm:$0xff] }
 0x16f   :  { %v555_v60 = vld [vmem:[#allocation8 + $0x670] sm:$0xff] }
 0x203   :  { %v334_v17 = vpop.f32.mrb[0].mxu1 }
 0x204   :  { %v335_v20 = vadd.f32 %v334_v17, %v261_v12  ;;  %v336_v21 = vpop.f32.mrb[1].mxu1  ;;  %v1272_v17 = vpack.c.bf16 %v428_v8, %v420_v7  ;;  %v498_v7 = vld [vmem:[#allocation8 + $0x4a8] sm:$0xff] }
 0x205   :  { %v337_v25 = vadd.f32 %v336_v21, %v265_v15  ;;  %v442_v21 = vld [vmem:[#allocation8 + $0x2e8] sm:$0xff] }
 0x206   :  { %v1586_v34 = vmax.f32 %v335_v20, 0.0  ;;  %v434_v20 = vld [vmem:[#allocation8 + $0x2a8] sm:$0xff] }
 0x207   :  { %v346_v29 = vmax.f32 %v337_v25, 0.0  ;;  %v340_v30 = vpop.f32.mrb[2].mxu1  ;;  %v1274_v25 = vpack.c.bf16 %v427_v19, %v419_v18  ;;  %v1212_v28 = vpack.c.bf16 %v442_v21, %v434_v20  ;;  %v506_v8 = vld [vmem:[#allocation8 + $0x4e8] sm:$0xff]  ;;  %v499_v20 = vld [vmem:[#allocation8 + $0x4b0] sm:$0xff] }
 0x208   :  { %v341_v35 = vadd.f32 %v340_v30, %v261_v12  ;;  %v342_v36 = vpop.f32.mrb[3].mxu1  ;;  %v425_v12 = vld [vmem:[#allocation8 + $0x260] sm:$0xff]  ;;  %v435_v30 = vld [vmem:[#allocation8 + $0x2b0] sm:$0xff]  ;;  %v1228_v18 = vpack.c.bf16 %v506_v8, %v498_v7 }
 0x209   :  { %v343_v42 = vadd.f32 %v342_v36, %v265_v15  ;;  %711 = vmatprep.mubr.f32.mxu0 %v346_v29  ;;  %788 = vmatprep.mubr.f32.mxu1 %v346_v29  ;;  %v1208_v15 = vpack.c.bf16 %v426_v6, %v418_v5  ;;  %v1210_v24 = vpack.c.bf16 %v425_v12, %v417_v11  ;;  %v460_v36 = vld [vmem:[#allocation8 + $0x378] sm:$0xff]  ;;  %v483_v5 = vld [vmem:[#allocation8 + $0x430] sm:$0xff] }
 0x20a   :  { %v1588_v44 = vmax.f32 %v341_v35, 0.0  ;;  %712 = vmatmul.mubr.f32.vlgmr.msra.gmra.mrb[4].mxu0 %v1586_v34  ;;  %789 = vmatmul.mubr.f32.vlgmr.msra.gmra.mrb[4].mxu1 %v1586_v34  ;;  %v452_v35 = vld [vmem:[#allocation8 + $0x338] sm:$0xff]  ;;  %v491_v6 = vld [vmem:[#allocation8 + $0x470] sm:$0xff] }
 0x20b   :  { %v1592_v48 = vmax.f32 %v343_v42, 0.0  ;;  %1195 = vmatpush1.bf16.msra.mxu0 %v1194_v31  ;;  %1259 = vmatpush1.bf16.msra.mxu1 %v1258_v32  ;;  %v443_v31 = vld [vmem:[#allocation8 + $0x2f0] sm:$0xff]  ;;  %v450_v32 = vld [vmem:[#allocation8 + $0x328] sm:$0xff]  ;;  %v1280_v42 = vpack.c.bf16 %v460_v36, %v452_v35  ;;  %v1290_v12 = vpack.c.bf16 %v491_v6, %v483_v5 }
 0x20c   :  { %1197 = vmatprep.subr.bf16.mxu0 %v1196_v37  ;;  %1261 = vmatprep.subr.bf16.mxu1 %v1260_v38  ;;  %v1214_v37 = vpack.c.bf16 %v441_v27, %v433_v26  ;;  %v1278_v38 = vpack.c.bf16 %v443_v31, %v435_v30  ;;  %v1216_v41 = vpack.c.bf16 %v458_v33, %v450_v32  ;;  %v507_v21 = vld [vmem:[#allocation8 + $0x4f0] sm:$0xff]  ;;  %v530_v35 = vld [vmem:[#allocation8 + $0x5a8] sm:$0xff] }
 0x20d   :  { %717 = vmatprep.mubr.f32.mxu0 %v1592_v48  ;;  %794 = vmatprep.mubr.f32.mxu1 %v1592_v48  ;;  %v1294_v27 = vpack.c.bf16 %v507_v21, %v499_v20  ;;  %v515_v32 = vld [vmem:[#allocation8 + $0x530] sm:$0xff]  ;;  %v538_v36 = vld [vmem:[#allocation8 + $0x5e8] sm:$0xff] }
 0x20e   :  { %718 = vmatmul.mubr.f32.gmra.mrb[6].mxu0 %v1588_v44  ;;  %795 = vmatmul.mubr.f32.gmra.mrb[6].mxu1 %v1588_v44  ;;  %v523_v33 = vld [vmem:[#allocation8 + $0x570] sm:$0xff]  ;;  %v1236_v43 = vpack.c.bf16 %v538_v36, %v530_v35 }
 0x20f   :  { %1199 = vmatpush1.bf16.msra.mxu0 %v1198_v49  ;;  %1263 = vmatpush1.bf16.msra.mxu1 %v1262_v50  ;;  %v468_v49 = vld [vmem:[#allocation8 + $0x3b8] sm:$0xff]  ;;  %v1298_v40 = vpack.c.bf16 %v523_v33, %v515_v32  ;;  %v563_v7 = vld [vmem:[#allocation8 + $0x6b0] sm:$0xff]  ;;  %v601_v33 = vld [vmem:[#allocation8 + $0x7e0] sm:$0xff] }
 0x210   :  { %865 = vmatprep.mubr.f32.mxu0 %v346_v29  ;;  %942 = vmatprep.mubr.f32.mxu1 %v346_v29  ;;  %v1276_v29 = vpack.c.bf16 %v444_v23, %v436_v22  ;;  %v476_v50 = vld [vmem:[#allocation8 + $0x3f8] sm:$0xff]  ;;  %v514_v22 = vld [vmem:[#allocation8 + $0x528] sm:$0xff]  ;;  %v571_v8 = vld [vmem:[#allocation8 + $0x6f0] sm:$0xff] }
 0x211   :  { %1201 = vmatprep.subr.bf16.mxu0 %v1200_v56  ;;  %1265 = vmatprep.subr.bf16.mxu1 %v1264_v57  ;;  %v1284_v56 = vpack.c.bf16 %v476_v50, %v468_v49  ;;  %v467_v57 = vld [vmem:[#allocation8 + $0x3b0] sm:$0xff]  ;;  %v522_v23 = vld [vmem:[#allocation8 + $0x568] sm:$0xff] }
 0x212   :  { %v1286_v0 = vpack.c.bf16 %v475_v58, %v467_v57  ;;  %v1232_v30 = vpack.c.bf16 %v522_v23, %v514_v22  ;;  %v546_v49 = vld [vmem:[#allocation8 + $0x628] sm:$0xff]  ;;  %v579_v22 = vld [vmem:[#allocation8 + $0x730] sm:$0xff] }
 0x213   :  { %1203 = vmatpush1.bf16.msra.mxu0 %v1202_v61  ;;  %1267 = vmatpush1.bf16.msra.mxu1 %v1266_v62  ;;  %v484_v61 = vld [vmem:[#allocation8 + $0x438] sm:$0xff]  ;;  %v554_v50 = vld [vmem:[#allocation8 + $0x668] sm:$0xff]  ;;  %v587_v23 = vld [vmem:[#allocation8 + $0x770] sm:$0xff] }
 0x214   :  { %1205 = vmatprep.subr.bf16.mxu0 %v1204_v1  ;;  %1269 = vmatprep.subr.bf16.mxu1 %v1268_v2  ;;  %v492_v62 = vld [vmem:[#allocation8 + $0x478] sm:$0xff]  ;;  %v481_v1 = vld [vmem:[#allocation8 + $0x420] sm:$0xff]  ;;  %v1240_v57 = vpack.c.bf16 %v554_v50, %v546_v49  ;;  %v595_v35 = vld [vmem:[#allocation8 + $0x7b0] sm:$0xff] }
 0x215   :  { %v489_v2 = vld [vmem:[#allocation8 + $0x460] sm:$0xff]  ;;  %v1288_v4 = vpack.c.bf16 %v492_v62, %v484_v61  ;;  %v562_v61 = vld [vmem:[#allocation8 + $0x6a8] sm:$0xff]  ;;  %v603_v36 = vld [vmem:[#allocation8 + $0x7f0] sm:$0xff] }
 0x216   :  { %v1226_v11 = vpack.c.bf16 %v489_v2, %v481_v1  ;;  %v570_v62 = vld [vmem:[#allocation8 + $0x6e8] sm:$0xff]  ;;  %v1306_v2 = vpack.c.bf16 %v555_v60, %v547_v59  ;;  %v625_v59 = vsub.s32 4, %v1568_v13  ;;  %v633_v60 = vsub.s32 6, %v1568_v13 }
 0x217   :  { %1207 = vmatpush1.bf16.msra.mxu0 %v1206_v9  ;;  %1271 = vmatpush1.bf16.msra.mxu1 %v1270_v10  ;;  %v500_v9 = vld [vmem:[#allocation8 + $0x4b8] sm:$0xff]  ;;  %v1244_v5 = vpack.c.bf16 %v570_v62, %v562_v61  ;;  %v629_v61 = vsub.s32 5, %v1568_v13  ;;  %v637_v62 = vsub.s32 7, %v1568_v13 }
 0x218   :  { %1209 = vmatprep.subr.bf16.mxu0 %v1208_v15  ;;  %1273 = vmatprep.subr.bf16.mxu1 %v1272_v17  ;;  %v508_v10 = vld [vmem:[#allocation8 + $0x4f8] sm:$0xff]  ;;  %v497_v15 = vld [vmem:[#allocation8 + $0x4a0] sm:$0xff] }
 0x219   :  { %v505_v17 = vld [vmem:[#allocation8 + $0x4e0] sm:$0xff]  ;;  %v1292_v19 = vpack.c.bf16 %v508_v10, %v500_v9  ;;  %v578_v9 = vld [vmem:[#allocation8 + $0x728] sm:$0xff] }
 0x21a   :  { %v1230_v26 = vpack.c.bf16 %v505_v17, %v497_v15  ;;  %v586_v10 = vld [vmem:[#allocation8 + $0x768] sm:$0xff]  ;;  %v1310_v17 = vpack.c.bf16 %v571_v8, %v563_v7 }
 0x21b   :  { %1211 = vmatpush1.bf16.msra.mxu0 %v1210_v24  ;;  %1275 = vmatpush1.bf16.msra.mxu1 %v1274_v25  ;;  %v516_v24 = vld [vmem:[#allocation8 + $0x538] sm:$0xff]  ;;  %v1248_v20 = vpack.c.bf16 %v586_v10, %v578_v9 }
 0x21c   :  { %1213 = vmatprep.subr.bf16.mxu0 %v1212_v28  ;;  %1277 = vmatprep.subr.bf16.mxu1 %v1276_v29  ;;  %v524_v25 = vld [vmem:[#allocation8 + $0x578] sm:$0xff]  ;;  %v513_v28 = vld [vmem:[#allocation8 + $0x520] sm:$0xff] }
 0x21d   :  { %v521_v29 = vld [vmem:[#allocation8 + $0x560] sm:$0xff]  ;;  %v1296_v31 = vpack.c.bf16 %v524_v25, %v516_v24  ;;  %v594_v24 = vld [vmem:[#allocation8 + $0x7a8] sm:$0xff] }
 0x21e   :  { %v1234_v39 = vpack.c.bf16 %v521_v29, %v513_v28  ;;  %v602_v25 = vld [vmem:[#allocation8 + $0x7e8] sm:$0xff]  ;;  %v1314_v29 = vpack.c.bf16 %v587_v23, %v579_v22 }
 0x21f   :  { %1215 = vmatpush1.bf16.msra.mxu0 %v1214_v37  ;;  %1279 = vmatpush1.bf16.msra.mxu1 %v1278_v38  ;;  %v532_v37 = vld [vmem:[#allocation8 + $0x5b8] sm:$0xff] }
 0x220   :  { %1217 = vmatprep.subr.bf16.mxu0 %v1216_v41  ;;  %1281 = vmatprep.subr.bf16.mxu1 %v1280_v42  ;;  %v540_v38 = vld [vmem:[#allocation8 + $0x5f8] sm:$0xff]  ;;  %v529_v41 = vld [vmem:[#allocation8 + $0x5a0] sm:$0xff] }
 0x221   :  { %v537_v42 = vld [vmem:[#allocation8 + $0x5e0] sm:$0xff]  ;;  %v1300_v45 = vpack.c.bf16 %v540_v38, %v532_v37  ;;  %v1318_v38 = vpack.c.bf16 %v603_v36, %v595_v35 }
 0x222   :  { %v1238_v53 = vpack.c.bf16 %v537_v42, %v529_v41  ;;  %v621_v41 = vsub.s32 3, %v1568_v13 }
 0x223   :  { %1219 = vmatpush1.bf16.msra.mxu0 %v1218_v51  ;;  %1283 = vmatpush1.bf16.msra.mxu1 %v1282_v52  ;;  %v548_v51 = vld [vmem:[#allocation8 + $0x638] sm:$0xff] }
 0x224   :  { %1221 = vmatprep.subr.bf16.mxu0 %v1220_v55  ;;  %1285 = vmatprep.subr.bf16.mxu1 %v1284_v56  ;;  %v556_v52 = vld [vmem:[#allocation8 + $0x678] sm:$0xff]  ;;  %v545_v55 = vld [vmem:[#allocation8 + $0x620] sm:$0xff] }
 0x225   :  { %v553_v56 = vld [vmem:[#allocation8 + $0x660] sm:$0xff]  ;;  %v1304_v58 = vpack.c.bf16 %v556_v52, %v548_v51 }
 0x226   :  { %v1242_v1 = vpack.c.bf16 %v553_v56, %v545_v55 }
 0x227   :  { %1223 = vmatpush1.bf16.msra.mxu0 %v1222_v63  ;;  %1287 = vmatpush1.bf16.msra.mxu1 %v1286_v0  ;;  %v564_v63 = vld [vmem:[#allocation8 + $0x6b8] sm:$0xff] }
 0x228   :  { %1225 = vmatprep.subr.bf16.mxu0 %v1224_v3  ;;  %1289 = vmatprep.subr.bf16.mxu1 %v1288_v4  ;;  %v572_v0 = vld [vmem:[#allocation8 + $0x6f8] sm:$0xff]  ;;  %v561_v3 = vld [vmem:[#allocation8 + $0x6a0] sm:$0xff] }
 0x229   :  { %v569_v4 = vld [vmem:[#allocation8 + $0x6e0] sm:$0xff]  ;;  %v1308_v6 = vpack.c.bf16 %v572_v0, %v564_v63 }
 0x22a   :  { %v1246_v15 = vpack.c.bf16 %v569_v4, %v561_v3 }
 0x22b   :  { %1227 = vmatpush1.bf16.msra.mxu0 %v1226_v11  ;;  %1291 = vmatpush1.bf16.msra.mxu1 %v1290_v12  ;;  %v580_v11 = vld [vmem:[#allocation8 + $0x738] sm:$0xff] }
 0x22c   :  { %1229 = vmatprep.subr.bf16.mxu0 %v1228_v18  ;;  %1293 = vmatprep.subr.bf16.mxu1 %v1292_v19  ;;  %v588_v12 = vld [vmem:[#allocation8 + $0x778] sm:$0xff]  ;;  %v577_v18 = vld [vmem:[#allocation8 + $0x720] sm:$0xff] }
 0x22d   :  { %v585_v19 = vld [vmem:[#allocation8 + $0x760] sm:$0xff]  ;;  %v1312_v21 = vpack.c.bf16 %v588_v12, %v580_v11 }
 0x22e   :  { %v1250_v28 = vpack.c.bf16 %v585_v19, %v577_v18 }
 0x22f   :  { %1231 = vmatpush1.bf16.msra.mxu0 %v1230_v26  ;;  %1295 = vmatpush1.bf16.msra.mxu1 %v1294_v27  ;;  %v596_v26 = vld [vmem:[#allocation8 + $0x7b8] sm:$0xff] }
 0x230   :  { %1233 = vmatprep.subr.bf16.mxu0 %v1232_v30  ;;  %1297 = vmatprep.subr.bf16.mxu1 %v1296_v31  ;;  %v604_v27 = vld [vmem:[#allocation8 + $0x7f8] sm:$0xff]  ;;  %v593_v30 = vld [vmem:[#allocation8 + $0x7a0] sm:$0xff]  ;;  %v1252_v31 = vpack.c.bf16 %v602_v25, %v594_v24 }
 0x231   :  { %v1316_v32 = vpack.c.bf16 %v604_v27, %v596_v26  ;;  %v1254_v37 = vpack.c.bf16 %v601_v33, %v593_v30 }
 0x233   :  { %1235 = vmatpush1.bf16.msra.mxu0 %v1234_v39  ;;  %1299 = vmatpush1.bf16.msra.mxu1 %v1298_v40  ;;  %v617_v39 = vsub.s32 2, %v1568_v13  ;;  %v605_v40 = vld [vmem:[%s1636_s6] sm:$0xff]  ;;  %s1461_s6 = smov [#allocation10]  }
 0x234   :  { %1237 = vmatprep.subr.bf16.mxu0 %v1236_v43  ;;  %1301 = vmatprep.subr.bf16.mxu1 %v1300_v45  ;;  %v610_v42 = vrot.slane %v605_v40, %v1571_v14  ;;  %v622_v45 = vrot.slane %v605_v40, %v621_v41  ;;  %v626_v63 = vrot.slane %v605_v40, %v625_v59  ;;  %s976_s8 = sshll.u32 %s1461_s6, 4  ;;  %s977_s8 = int_to_ptr.vmem [resolvable:$true] %s976_s8 }
 0x235   :  { %v618_v43 = vrot.slane %v605_v40, %v617_v39  ;;  %v634_v0 = vrot.slane %v605_v40, %v633_v60  ;;  %s1420_s9 = scalar_lea.vmem %s977_s8, 2048  ;;  %p1425_p5 = scmp.lt.s32.totalorder %s977_s8, %s977_s8 }
 0x236   :  { %p1421_p4 = scmp.ne.s32.totalorder %s977_s8, %s1420_s9  ;;  %p1426_p6 = scmp.lt.s32.totalorder %s1420_s9, %s1420_s9 }
 0x237   :  { %1239 = vmatpush1.bf16.msra.mxu0 %v1238_v53  ;;  %1303 = vmatpush1.bf16.msra.mxu1 %v1302_v54 }
 0x238   :  { %1241 = vmatprep.subr.bf16.mxu0 %v1240_v57  ;;  %1305 = vmatprep.subr.bf16.mxu1 %v1304_v58  ;;  %p1427_p7 = por %p1426_p6, %p1425_p5 }
 0x23a   :  { %p1428_p8 = pnand %p1427_p7, %p1421_p4 }
 0x23b   :  { %1243 = vmatpush1.bf16.msra.mxu0 %v1242_v1  ;;  %1307 = vmatpush1.bf16.msra.mxu1 %v1306_v2  ;;  %v630_v1 = vrot.slane %v605_v40, %v629_v61  ;;  %v638_v2 = vrot.slane %v605_v40, %v637_v62 }
 0x23c   :  { %1245 = vmatprep.subr.bf16.mxu0 %v1244_v5  ;;  %1309 = vmatprep.subr.bf16.mxu1 %v1308_v6 }
 0x23f   :  { %1247 = vmatpush1.bf16.msra.mxu0 %v1246_v15  ;;  %1311 = vmatpush1.bf16.msra.mxu1 %v1310_v17 }
 0x240   :  { %1249 = vmatprep.subr.bf16.mxu0 %v1248_v20  ;;  %1313 = vmatprep.subr.bf16.mxu1 %v1312_v21 }
 0x243   :  { %1251 = vmatpush1.bf16.msra.mxu0 %v1250_v28  ;;  %1315 = vmatpush1.bf16.msra.mxu1 %v1314_v29 }
 0x244   :  { %1253 = vmatprep.subr.bf16.mxu0 %v1252_v31  ;;  %1317 = vmatprep.subr.bf16.mxu1 %v1316_v32 }
 0x247   :  { %1255 = vmatpush1.bf16.msra.mxu0 %v1254_v37  ;;  %1319 = vmatpush1.bf16.msra.mxu1 %v1318_v38 }
 0x24a   :  { %866 = vmatmul.mubr.f32.vlgmr.msra.gmra.mrb[8].mxu0 %v1586_v34  ;;  %943 = vmatmul.mubr.f32.vlgmr.msra.gmra.mrb[8].mxu1 %v1586_v34  ;;  %v614_v34 = vrot.slane %v605_v40, %v1577_v16 }
 0x24b   :  { %871 = vmatprep.mubr.f32.mxu0 %v1592_v48  ;;  %948 = vmatprep.mubr.f32.mxu1 %v1592_v48 }
 0x24e   :  { %872 = vmatmul.mubr.f32.gmra.mrb[10].mxu0 %v1588_v44  ;;  %949 = vmatmul.mubr.f32.gmra.mrb[10].mxu1 %v1588_v44 }
 0x2dd   :  { %v713_v46 = vpop.f32.mrb[4].mxu0  ;;  %v790_v48 = vpop.f32.mrb[4].mxu1 }
 0x2de   :  { %v714_v47 = vadd.f32 %v713_v46, %v610_v42  ;;  %v791_v49 = vadd.f32 %v790_v48, %v618_v43  ;;  %v715_v50 = vpop.f32.mrb[5].mxu0  ;;  %v792_v44 = vpop.f32.mrb[5].mxu1 }
 0x2df   :  { %v716_v51 = vadd.f32 %v715_v50, %v614_v34  ;;  %v793_v52 = vadd.f32 %v792_v44, %v622_v45 }
 0x2e0   :  { %955 = vst [vmem:[#allocation10] sm:$0xff] %v714_v47  ;;  %957 = vst [vmem:[#allocation10 + $0x10] sm:$0xff] %v791_v49 }
 0x2e1   :  { %956 = vst [vmem:[#allocation10 + $0x8] sm:$0xff] %v716_v51  ;;  %958 = vst [vmem:[#allocation10 + $0x18] sm:$0xff] %v793_v52  ;;  %v719_v53 = vpop.f32.mrb[6].mxu0  ;;  %v796_v54 = vpop.f32.mrb[6].mxu1 }
 0x2e2   :  { %v720_v55 = vadd.f32 %v719_v53, %v610_v42  ;;  %v797_v14 = vadd.f32 %v796_v54, %v618_v43  ;;  %v721_v56 = vpop.f32.mrb[7].mxu0  ;;  %v798_v57 = vpop.f32.mrb[7].mxu1 }
 0x2e3   :  { %v722_v16 = vadd.f32 %v721_v56, %v614_v34  ;;  %v799_v58 = vadd.f32 %v798_v57, %v622_v45 }
 0x2e4   :  { %963 = vst [vmem:[#allocation10 + $0x40] sm:$0xff] %v720_v55  ;;  %965 = vst [vmem:[#allocation10 + $0x50] sm:$0xff] %v797_v14 }
 0x2e5   :  { %964 = vst [vmem:[#allocation10 + $0x48] sm:$0xff] %v722_v16  ;;  %966 = vst [vmem:[#allocation10 + $0x58] sm:$0xff] %v799_v58 }
 0x31d   :  { %v867_v3 = vpop.f32.mrb[8].mxu0  ;;  %v944_v4 = vpop.f32.mrb[8].mxu1 }
 0x31e   :  { %v868_v5 = vadd.f32 %v867_v3, %v626_v63  ;;  %v945_v6 = vadd.f32 %v944_v4, %v634_v0  ;;  %v869_v7 = vpop.f32.mrb[9].mxu0  ;;  %v946_v8 = vpop.f32.mrb[9].mxu1 }
 0x31f   :  { %v870_v9 = vadd.f32 %v869_v7, %v630_v1  ;;  %v947_v10 = vadd.f32 %v946_v8, %v638_v2 }
 0x320   :  { %959 = vst [vmem:[#allocation10 + $0x20] sm:$0xff] %v868_v5  ;;  %961 = vst [vmem:[#allocation10 + $0x30] sm:$0xff] %v945_v6 }
 0x321   :  { %960 = vst [vmem:[#allocation10 + $0x28] sm:$0xff] %v870_v9  ;;  %962 = vst [vmem:[#allocation10 + $0x38] sm:$0xff] %v947_v10  ;;  %v873_v11 = vpop.f32.mrb[10].mxu0  ;;  %v950_v13 = vpop.f32.mrb[10].mxu1 }
 0x322   :  { %v874_v12 = vadd.f32 %v873_v11, %v626_v63  ;;  %v951_v15 = vadd.f32 %v950_v13, %v634_v0  ;;  %v875_v17 = vpop.f32.mrb[11].mxu0  ;;  %v952_v18 = vpop.f32.mrb[11].mxu1 }
 0x323   :  { %v876_v19 = vadd.f32 %v875_v17, %v630_v1  ;;  %v953_v20 = vadd.f32 %v952_v18, %v638_v2 }
 0x324   :  { %967 = vst [vmem:[#allocation10 + $0x60] sm:$0xff] %v874_v12  ;;  %969 = vst [vmem:[#allocation10 + $0x70] sm:$0xff] %v951_v15 }
 0x325   :  { %968 = vst [vmem:[#allocation10 + $0x68] sm:$0xff] %v876_v19  ;;  %970 = vst [vmem:[#allocation10 + $0x78] sm:$0xff] %v953_v20 }
 0x326   :  { %1431 = shalt.err (!%p1428_p8)
}
 0x327   :  { %s1432_s14 = scalar_lea.hbm %s1637_s7, 2048 }
 0x328   :  { %p1433_p9 = scmp.ne.s32.totalorder %s1637_s7, %s1432_s14  ;;  %p1436_p10 = scmp.lt.u32.totalorder %s1432_s14, %s1637_s7 }
 0x32a   :  { %p1438_p11 = pnand %p1436_p10, %p1433_p9 }
 0x32c   :  { %1441 = shalt.err (!%p1438_p11)
}
 0x32d   :  { %982 = dma.vmem_to_hbm [thread:$0]  %s977_s8, 2048, %s1637_s7, [#allocation4], %s1458_s3, %s1458_s3, %s1459_s11  }
 0x32e   :  { %1448 = dma.done.wait [#allocation4], 2048  }
 0x32f   :  { %1449 = vsyncadd [#allocation4], 4294965248 }
 0x330   :  { %986 = vsyncpa [#allocation3], 1 }
 0x331   :  { %987 = vsyncpa [#allocation6], 1 }
 0x332   :  { %988 = vsyncpa [#allocation9], 1 }
 0x333   :  { %989 = vsyncpa [#allocation4], 1 }

</bundles_post_ra>
